<compile_context>
chip_gen: v6e
topology: v6e:2x2x1
jax: 0.10.0
libtpu: 0.0.40
codegen_flags: <defaults>
</compile_context>

<pallas_src>
import math
import random

import jax
import jax.numpy as jnp
from jax import lax
from jax.experimental import pallas as pl
from jax.experimental.pallas import tpu as pltpu

NEG_BIG = 1e9


# --------------------------------------------------------------------------
# Kernel: one grid step == one decode step, whole (padded) batch.
# --------------------------------------------------------------------------
def _fused_decode_kernel(tf_ref,        # SMEM (Tt,) int32 teacher-forcing flags
                         we_hbm,        # ANY  (B, T, E)   bf16 masked word embeddings
                         ke_hbm,        # ANY  (B, Kw, E)  bf16 masked keyword embeddings
                         sm_ref,        # VMEM (B, 1, T)   f32 source length mask
                         km_ref,        # VMEM (B, 1, Kw)  f32 keyword length mask
                         init_ref,      # VMEM (B, E)      f32 initial decoder-input sum
                         tgt_ref,       # VMEM (B, E)      f32 this step's target embedding
                         w_hbm,         # ANY  (3, E, Vpad) bf16 stacked output projection
                         tab_hbm,       # ANY  (Vpad, E)   bf16 padded embedding table
                         bias_ref,      # VMEM (1, Vpad)   f32 vocab-padding additive bias
                         probs_ref,     # out  (B, Vpad)   f32 prob distribution (this step)
                         loss_ref,      # out  (1, 1, 1)   f32 resident coverage-loss acc
                         we_sc,         # scratch (B, T, E)  bf16 (single-buffered resident)
                         ke_sc,         # scratch (B, Kw, E) bf16
                         w_sc,          # scratch (3, E, Vpad) bf16
                         tab_sc,        # scratch (Vpad, E)  bf16
                         copy_sem,      # scratch DMA semaphores (4,)
                         sum_sc,        # scratch (B, E)   f32 running decoder-input sum
                         cc_sc,         # scratch (B, 1, T) f32 copy coverage
                         kc_sc,         # scratch (B, 1, Kw) f32 keyword coverage
                         next_sc):      # scratch (B, E)   f32 selected next input
    step = pl.program_id(0)
    B, Vpad = probs_ref.shape
    T = we_sc.shape[1]

    @pl.when(step == 0)
    def _init():
        # One-shot DMA of all step-invariant operands into single-buffered VMEM.
        copies = (
            pltpu.make_async_copy(we_hbm, we_sc, copy_sem.at[0]),
            pltpu.make_async_copy(ke_hbm, ke_sc, copy_sem.at[1]),
            pltpu.make_async_copy(w_hbm, w_sc, copy_sem.at[2]),
            pltpu.make_async_copy(tab_hbm, tab_sc, copy_sem.at[3]),
        )
        for c in copies:
            c.start()
        for c in copies:
            c.wait()
        sum_sc[...] = init_ref[...]
        cc_sc[...] = jnp.zeros_like(cc_sc)
        kc_sc[...] = jnp.zeros_like(kc_sc)
        loss_ref[...] = jnp.zeros_like(loss_ref)

    # --- query = mean of the (growing) decoder_input, via O(1) running sum
    inv_count = 1.0 / (jnp.float32(T + 2) + step.astype(jnp.float32))
    q = sum_sc[...] * inv_count                                   # (B, E) f32
    q_bf = q.astype(jnp.bfloat16)
    q3 = q_bf[:, None, :]                                         # (B, 1, E) bf16

    we = we_sc[...]                                               # (B, T, E) bf16
    ke = ke_sc[...]                                               # (B, Kw, E) bf16
    sm = sm_ref[...]                                              # (B, 1, T) f32
    km = km_ref[...]                                              # (B, 1, Kw) f32

    # --- copy attention over the source sequence (MXU batched dot)
    s_scores = jnp.einsum('bqe,bte->bqt', q3, we,
                          preferred_element_type=jnp.float32)     # (B, 1, T)
    s_scores = s_scores + (sm - 1.0) * NEG_BIG
    s_scores = s_scores - jnp.max(s_scores, axis=-1, keepdims=True)
    s_exp = jnp.exp(s_scores) * sm
    s_den = jnp.sum(s_exp, axis=-1, keepdims=True) + 1e-9
    s_attn = s_exp * pl.reciprocal(s_den, approx=True)            # (B, 1, T)

    # --- keyword attention (MXU batched dot)
    k_scores = jnp.einsum('bqe,bke->bqk', q3, ke,
                          preferred_element_type=jnp.float32)     # (B, 1, Kw)
    k_scores = k_scores + (km - 1.0) * NEG_BIG
    k_scores = k_scores - jnp.max(k_scores, axis=-1, keepdims=True)
    k_exp = jnp.exp(k_scores) * km
    k_den = jnp.sum(k_exp, axis=-1, keepdims=True) + 1e-9
    k_attn = k_exp * pl.reciprocal(k_den, approx=True)            # (B, 1, Kw)

    # --- coverage loss (vs OLD coverage) + coverage updates (resident scratch)
    cc = cc_sc[...]
    kc = kc_sc[...]
    cov_min = (jnp.sum(jnp.minimum(s_attn, cc), axis=2, keepdims=True)
               + jnp.sum(jnp.minimum(k_attn, kc), axis=2, keepdims=True))  # (B,1,1)
    loss_ref[...] = loss_ref[...] + jnp.sum(cov_min, axis=0, keepdims=True)
    cc_sc[...] = cc + s_attn
    kc_sc[...] = kc + k_attn

    # --- attention contexts (MXU batched dots)
    ctx_s = jnp.einsum('bqt,bte->bqe', s_attn.astype(jnp.bfloat16), we,
                       preferred_element_type=jnp.float32)[:, 0, :]        # (B, E)
    ctx_k = jnp.einsum('bqk,bke->bqe', k_attn.astype(jnp.bfloat16), ke,
                       preferred_element_type=jnp.float32)[:, 0, :]        # (B, E)

    # --- output projection: three accumulating (B,E) x (E,Vpad) MXU dots
    logits = jnp.dot(q_bf, w_sc[0], preferred_element_type=jnp.float32)
    logits = logits + jnp.dot(ctx_s.astype(jnp.bfloat16), w_sc[1],
                              preferred_element_type=jnp.float32)
    logits = logits + jnp.dot(ctx_k.astype(jnp.bfloat16), w_sc[2],
                              preferred_element_type=jnp.float32)
    logits = logits + bias_ref[...]               # kill padded vocab columns

    # exact softmax for the emitted probability distribution
    logits = logits - jnp.max(logits, axis=-1, keepdims=True)
    e = jnp.exp(logits)
    probs = e / jnp.sum(e, axis=-1, keepdims=True)
    probs_ref[...] = probs

    # --- next decoder input: teacher forcing (per step) OR greedy argmax
    @pl.when(tf_ref[step] == 1)
    def _teacher():
        next_sc[...] = tgt_ref[...]

    @pl.when(tf_ref[step] == 0)
    def _greedy():
        col = lax.broadcasted_iota(jnp.int32, (B, Vpad), 1)
        m = jnp.max(probs, axis=-1, keepdims=True)
        cand = jnp.where(probs >= m, col, Vpad)
        first_idx = jnp.min(cand, axis=-1, keepdims=True)         # (B, 1)
        onehot = (col == first_idx).astype(tab_sc.dtype)          # (B, Vpad)
        next_sc[...] = jnp.dot(onehot, tab_sc[...],
                               preferred_element_type=jnp.float32)

    sum_sc[...] = sum_sc[...] + next_sc[...]


# --------------------------------------------------------------------------
# pallas_call wrapper
# --------------------------------------------------------------------------
def _round_up(x, m):
    return ((x + m - 1) // m) * m


def _padded_vmem_bytes(shape, dtype):
    item = jnp.dtype(dtype).itemsize
    sub = 8 * max(1, 4 // item)           # sublane granularity: 8 f32 / 16 bf16
    if len(shape) == 1:
        return _round_up(shape[0], 128) * item
    lead = 1
    for d in shape[:-2]:
        lead *= d
    return lead * _round_up(shape[-2], sub) * _round_up(shape[-1], 128) * item


def fused_decode(tf_flags, word_emb, kw_emb, src_mask3, kw_mask3, init_sum,
                 target_emb_t, w_stacked, emb_table_pad, vocab_bias):
    Tt, Bp, E = target_emb_t.shape
    T = word_emb.shape[1]
    Kw = kw_emb.shape[1]
    Vpad = w_stacked.shape[2]

    # scoped-VMEM budget sized to the actual residency (with headroom), <= 64 MiB
    resident_bytes = (
        _padded_vmem_bytes((Bp, T, E), jnp.bfloat16)
        + _padded_vmem_bytes((Bp, Kw, E), jnp.bfloat16)
        + _padded_vmem_bytes((3, E, Vpad), jnp.bfloat16)
        + _padded_vmem_bytes((Vpad, E), jnp.bfloat16)
        + 2 * _padded_vmem_bytes((Bp, E), jnp.float32)
        + _padded_vmem_bytes((Bp, 1, T), jnp.float32)
        + _padded_vmem_bytes((Bp, 1, Kw), jnp.float32))
    pipelined_bytes = 2 * (
        _padded_vmem_bytes((Bp, 1, T), jnp.float32)
        + _padded_vmem_bytes((Bp, 1, Kw), jnp.float32)
        + 2 * _padded_vmem_bytes((Bp, E), jnp.float32)
        + _padded_vmem_bytes((1, Vpad), jnp.float32)
        + _padded_vmem_bytes((Bp, Vpad), jnp.float32)
        + _padded_vmem_bytes((1, 1, 1), jnp.float32))
    vmem_limit = int(min(64 * 1024 * 1024,
                         max(16 * 1024 * 1024,
                             2 * (resident_bytes + pipelined_bytes))))

    grid_spec = pltpu.PrefetchScalarGridSpec(
        num_scalar_prefetch=1,                 # teacher-forcing flags -> SMEM
        grid=(Tt,),                            # one grid step per decode step
        in_specs=[
            pl.BlockSpec(memory_space=pl.ANY),                         # word emb (HBM)
            pl.BlockSpec(memory_space=pl.ANY),                         # kw emb   (HBM)
            pl.BlockSpec((Bp, 1, T), lambda s, tf: (0, 0, 0)),         # src mask
            pl.BlockSpec((Bp, 1, Kw), lambda s, tf: (0, 0, 0)),        # kw mask
            pl.BlockSpec((Bp, E), lambda s, tf: (0, 0)),               # init sum
            pl.BlockSpec((None, Bp, E), lambda s, tf: (s, 0, 0)),      # per-step target
            pl.BlockSpec(memory_space=pl.ANY),                         # proj weights (HBM)
            pl.BlockSpec(memory_space=pl.ANY),                         # emb table (HBM)
            pl.BlockSpec((1, Vpad), lambda s, tf: (0, 0)),             # vocab bias
        ],
        out_specs=[
            pl.BlockSpec((None, Bp, Vpad), lambda s, tf: (s, 0, 0)),   # lane-dense probs
            pl.BlockSpec((1, 1, 1), lambda s, tf: (0, 0, 0)),          # resident loss acc
        ],
        scratch_shapes=[
            pltpu.VMEM((Bp, T, E), jnp.bfloat16),    # resident word embeddings
            pltpu.VMEM((Bp, Kw, E), jnp.bfloat16),   # resident keyword embeddings
            pltpu.VMEM((3, E, Vpad), jnp.bfloat16),  # resident projection weights
            pltpu.VMEM((Vpad, E), jnp.bfloat16),     # resident embedding table
            pltpu.SemaphoreType.DMA((4,)),           # one-shot copy semaphores
            pltpu.VMEM((Bp, E), jnp.float32),        # running decoder-input sum
            pltpu.VMEM((Bp, 1, T), jnp.float32),     # copy coverage
            pltpu.VMEM((Bp, 1, Kw), jnp.float32),    # keyword coverage
            pltpu.VMEM((Bp, E), jnp.float32),        # selected next input
        ],
    )
    probs, loss = pl.pallas_call(
        _fused_decode_kernel,
        out_shape=(
            jax.ShapeDtypeStruct((Tt, Bp, Vpad), jnp.float32),
            jax.ShapeDtypeStruct((1, 1, 1), jnp.float32),
        ),
        grid_spec=grid_spec,
        # decode steps carry state -> the single grid axis must stay sequential
        compiler_params=pltpu.CompilerParams(
            dimension_semantics=("arbitrary",),
            vmem_limit_bytes=vmem_limit),
    )(tf_flags, word_emb, kw_emb, src_mask3, kw_mask3, init_sum,
      target_emb_t, w_stacked, emb_table_pad, vocab_bias)
    return probs, loss


# --------------------------------------------------------------------------
# Parameters + Seq2Seq forward wrapper (plain-JAX glue, jitted).
# --------------------------------------------------------------------------
def init_params(key, vocab_size, output_size, embedding_size):
    k1, k2, k3, k4 = jax.random.split(key, 4)
    scale = 0.02
    return {
        # shared token-embedding table (stands in for the Bert model)
        "emb_table": scale * jax.random.normal(
            k1, (vocab_size, embedding_size), jnp.float32),
        "wq": scale * jax.random.normal(k2, (embedding_size, output_size), jnp.float32),
        "ws": scale * jax.random.normal(k3, (embedding_size, output_size), jnp.float32),
        "wk": scale * jax.random.normal(k4, (embedding_size, output_size), jnp.float32),
    }


def _seq2seq_impl(params, source, source_lens, target, keywords, keywords_len, tf_flags):
    emb_table = params["emb_table"]
    B, T = source.shape
    Kw = keywords.shape[1]
    E = emb_table.shape[1]
    V = params["wq"].shape[1]
    Vpad = _round_up(V, 128)
    Bp = _round_up(B, 8)              # sublane-pad the batch (padded rows are masked out)

    # TODO(synk): BertEncoder / KeywordEncoder / Decoder / GreedySearch internals are not
    # in the provided module; deterministic shape-compatible stand-ins are used.
    def bert_encode(tokens):
        emb = jnp.take(emb_table, tokens, axis=0)       # [.., L, E]
        doc = jnp.mean(emb, axis=1, keepdims=True)      # [.., 1, E]
        return emb, doc

    word_emb, doc_emb = bert_encode(source)                               # (B,T,E),(B,1,E)
    kw_emb = jnp.mean(jnp.take(emb_table, keywords, axis=0), axis=2)      # (B,Kw,E)
    target_emb, _ = bert_encode(target)                                   # (B,Tt,E)
    # round targets through bf16 so teacher-forced and greedy inputs share precision
    target_emb = target_emb.astype(jnp.bfloat16).astype(jnp.float32)

    src_mask = (jnp.arange(T)[None, :] < source_lens[:, None]).astype(jnp.float32)
    kw_mask = (jnp.arange(Kw)[None, :] < keywords_len[:, None]).astype(jnp.float32)

    # per-sample length masking (the explicit loop in forward), folded into plain JAX
    word_emb = word_emb * src_mask[:, :, None]
    kw_emb = kw_emb * kw_mask[:, :, None]

    # initial decoder_input = cat(masked word emb, doc emb, GO emb): keep its SUM only
    go_emb = jnp.broadcast_to(emb_table[1][None, :], (B, E))
    init_sum = jnp.sum(word_emb, axis=1) + doc_emb[:, 0, :] + go_emb      # (B, E)

    pad_b = Bp - B

    def pad_batch(x):
        return jnp.pad(x, ((0, pad_b),) + ((0, 0),) * (x.ndim - 1))

    word_emb_p = pad_batch(word_emb).astype(jnp.bfloat16)                 # (Bp,T,E)
    kw_emb_p = pad_batch(kw_emb).astype(jnp.bfloat16)                     # (Bp,Kw,E)
    sm3 = pad_batch(src_mask)[:, None, :]                                 # (Bp,1,T)
    km3 = pad_batch(kw_mask)[:, None, :]                                  # (Bp,1,Kw)
    init_p = pad_batch(init_sum).astype(jnp.float32)                      # (Bp,E)
    tgt_p = jnp.pad(jnp.transpose(target_emb, (1, 0, 2)),
                    ((0, 0), (0, pad_b), (0, 0))).astype(jnp.float32)     # (Tt,Bp,E)

    # stacked output projection (3,E,Vpad) and padded embedding table, bf16 for the MXU
    w_stacked = jnp.stack([params["wq"], params["ws"], params["wk"]], axis=0)   # (3,E,V)
    w_stacked = jnp.pad(w_stacked, ((0, 0), (0, 0), (0, Vpad - V))).astype(jnp.bfloat16)
    if emb_table.shape[0] >= V:
        tab = emb_table[:V]
    else:
        tab = jnp.pad(emb_table, ((0, V - emb_table.shape[0]), (0, 0)))
    emb_table_pad = jnp.pad(tab, ((0, Vpad - V), (0, 0))).astype(jnp.bfloat16)  # (Vpad,E)
    vocab_bias = jnp.where(jnp.arange(Vpad) < V, 0.0, -NEG_BIG)
    vocab_bias = vocab_bias.astype(jnp.float32)[None, :]                        # (1,Vpad)

    probs, loss = fused_decode(
        tf_flags.astype(jnp.int32), word_emb_p, kw_emb_p, sm3, km3, init_p,
        tgt_p, w_stacked, emb_table_pad, vocab_bias)

    outputs = probs[:, :B, :V]          # [target_len, batch_size, output_size]
    return outputs, loss[0, 0, 0]


_seq2seq_impl_jit = jax.jit(_seq2seq_impl)


def seq2seq_forward(params, source, source_lens, target, keywords, keywords_len,
                    teacher_forcing_ratio=0.5, tf_seed=0):
    # teacher-forcing coin flips precomputed host-side (per step, shared across batch,
    # matching the reference), keeps the forward jittable
    target_len = int(target.shape[1])
    rng = random.Random(tf_seed)
    tf_flags = jnp.asarray(
        [1 if rng.random() < teacher_forcing_ratio else 0 for _ in range(target_len)],
        dtype=jnp.int32)
    return _seq2seq_impl_jit(params, source, source_lens, target, keywords,
                             keywords_len, tf_flags)


if __name__ == "__main__":
    B, T, target_len = 2, 8, 6
    Kw, Lw = 4, 3
    E = 32
    V = 64          # output_size == vocab_size of the synthetic Bert table

    key = jax.random.PRNGKey(0)
    kp, ks, kt, kk = jax.random.split(key, 4)
    params = init_params(kp, V, V, E)

    source = jax.random.randint(ks, (B, T), 0, V, dtype=jnp.int32)
    target = jax.random.randint(kt, (B, target_len), 0, V, dtype=jnp.int32)
    keywords = jax.random.randint(kk, (B, Kw, Lw), 0, V, dtype=jnp.int32)
    source_lens = jnp.array([T, T - 3], dtype=jnp.int32)
    keywords_len = jnp.array([Kw, 2], dtype=jnp.int32)

    outputs, cov_loss = seq2seq_forward(params, source, source_lens, target,
                                        keywords, keywords_len,
                                        teacher_forcing_ratio=0.5)
    outputs = jax.block_until_ready(outputs)
    cov_loss = jax.block_until_ready(cov_loss)

    assert outputs.shape == (target_len, B, V)
    assert bool(jnp.all(jnp.isfinite(outputs)))
    assert bool(jnp.isfinite(cov_loss))
    # probability rows should sum to ~1 (exact softmax division in the kernel)
    assert bool(jnp.all(jnp.abs(jnp.sum(outputs, axis=-1) - 1.0) < 1e-2))
    print("KERNEL_OK")
</pallas_src>

<mosaic_0001>
module attributes {stable_mosaic.version = 11 : i64} {
  func.func @_fused_decode_kernel(%arg0: i32, %arg1: memref<6xi32, #tpu.memory_space<smem>>, %arg2: memref<8x8x32xbf16, #tpu.memory_space<any>>, %arg3: memref<8x4x32xbf16, #tpu.memory_space<any>>, %arg4: memref<8x1x8xf32, #tpu.memory_space<vmem>>, %arg5: memref<8x1x4xf32, #tpu.memory_space<vmem>>, %arg6: memref<8x32xf32, #tpu.memory_space<vmem>>, %arg7: memref<1x8x32xf32, #tpu.memory_space<vmem>>, %arg8: memref<3x32x128xbf16, #tpu.memory_space<any>>, %arg9: memref<128x32xbf16, #tpu.memory_space<any>>, %arg10: memref<1x128xf32, #tpu.memory_space<vmem>>, %arg11: memref<1x8x128xf32, #tpu.memory_space<vmem>>, %arg12: memref<1x1x1xf32, #tpu.memory_space<vmem>>, %arg13: memref<8x8x32xbf16, #tpu.memory_space<vmem>>, %arg14: memref<8x4x32xbf16, #tpu.memory_space<vmem>>, %arg15: memref<3x32x128xbf16, #tpu.memory_space<vmem>>, %arg16: memref<128x32xbf16, #tpu.memory_space<vmem>>, %arg17: memref<4x!tpu.dma_semaphore, #tpu.memory_space<semaphore_mem>>, %arg18: memref<8x32xf32, #tpu.memory_space<vmem>>, %arg19: memref<8x1x8xf32, #tpu.memory_space<vmem>>, %arg20: memref<8x1x4xf32, #tpu.memory_space<vmem>>, %arg21: memref<8x32xf32, #tpu.memory_space<vmem>>) attributes {dimension_semantics = [#tpu.dimension_semantics<arbitrary>], iteration_bounds = array<i64: 6>, scalar_prefetch = 1 : i64, scratch_operands = 9 : i64, tpu.core_type = #tpu.core_type<tc>, window_params = [{}, {}, {pipeline_mode = #tpu.pipeline_mode<synchronous>, transform_indices = @transform_2, window_bounds = array<i64: 8, 1, 8>}, {pipeline_mode = #tpu.pipeline_mode<synchronous>, transform_indices = @transform_3, window_bounds = array<i64: 8, 1, 4>}, {pipeline_mode = #tpu.pipeline_mode<synchronous>, transform_indices = @transform_4, window_bounds = array<i64: 8, 32>}, {transform_indices = @transform_5, window_bounds = array<i64: 1, 8, 32>}, {}, {}, {pipeline_mode = #tpu.pipeline_mode<synchronous>, transform_indices = @transform_8, window_bounds = array<i64: 1, 128>}, {transform_indices = @transform_9, window_bounds = array<i64: 1, 8, 128>}, {pipeline_mode = #tpu.pipeline_mode<synchronous>, transform_indices = @transform_10, window_bounds = array<i64: 1, 1, 1>}]} {
    %c0_i32 = arith.constant 0 : i32
    %0 = arith.cmpi eq, %arg0, %c0_i32 : i32
    %1 = arith.extui %0 : i1 to i32
    %c0_i32_0 = arith.constant 0 : i32
    %2 = arith.cmpi ne, %1, %c0_i32_0 : i32
    scf.if %2 {
      %c0_i32_76 = arith.constant 0 : i32
      %119 = tpu.memref_slice %arg17[%c0_i32_76] : memref<4x!tpu.dma_semaphore, #tpu.memory_space<semaphore_mem>> -> memref<1x!tpu.dma_semaphore, #tpu.memory_space<semaphore_mem>>
      %120 = tpu.memref_squeeze %119 : memref<1x!tpu.dma_semaphore, #tpu.memory_space<semaphore_mem>> -> memref<!tpu.dma_semaphore, #tpu.memory_space<semaphore_mem>>
      tpu.enqueue_dma source(%arg2 : memref<8x8x32xbf16, #tpu.memory_space<any>>) target(%arg13 : memref<8x8x32xbf16, #tpu.memory_space<vmem>>) target_semaphore(%120 : memref<!tpu.dma_semaphore, #tpu.memory_space<semaphore_mem>>)
      %c1_i32_77 = arith.constant 1 : i32
      %121 = tpu.memref_slice %arg17[%c1_i32_77] : memref<4x!tpu.dma_semaphore, #tpu.memory_space<semaphore_mem>> -> memref<1x!tpu.dma_semaphore, #tpu.memory_space<semaphore_mem>>
      %122 = tpu.memref_squeeze %121 : memref<1x!tpu.dma_semaphore, #tpu.memory_space<semaphore_mem>> -> memref<!tpu.dma_semaphore, #tpu.memory_space<semaphore_mem>>
      tpu.enqueue_dma source(%arg3 : memref<8x4x32xbf16, #tpu.memory_space<any>>) target(%arg14 : memref<8x4x32xbf16, #tpu.memory_space<vmem>>) target_semaphore(%122 : memref<!tpu.dma_semaphore, #tpu.memory_space<semaphore_mem>>)
      %c2_i32 = arith.constant 2 : i32
      %123 = tpu.memref_slice %arg17[%c2_i32] : memref<4x!tpu.dma_semaphore, #tpu.memory_space<semaphore_mem>> -> memref<1x!tpu.dma_semaphore, #tpu.memory_space<semaphore_mem>>
      %124 = tpu.memref_squeeze %123 : memref<1x!tpu.dma_semaphore, #tpu.memory_space<semaphore_mem>> -> memref<!tpu.dma_semaphore, #tpu.memory_space<semaphore_mem>>
      tpu.enqueue_dma source(%arg8 : memref<3x32x128xbf16, #tpu.memory_space<any>>) target(%arg15 : memref<3x32x128xbf16, #tpu.memory_space<vmem>>) target_semaphore(%124 : memref<!tpu.dma_semaphore, #tpu.memory_space<semaphore_mem>>)
      %c3_i32 = arith.constant 3 : i32
      %125 = tpu.memref_slice %arg17[%c3_i32] : memref<4x!tpu.dma_semaphore, #tpu.memory_space<semaphore_mem>> -> memref<1x!tpu.dma_semaphore, #tpu.memory_space<semaphore_mem>>
      %126 = tpu.memref_squeeze %125 : memref<1x!tpu.dma_semaphore, #tpu.memory_space<semaphore_mem>> -> memref<!tpu.dma_semaphore, #tpu.memory_space<semaphore_mem>>
      tpu.enqueue_dma source(%arg9 : memref<128x32xbf16, #tpu.memory_space<any>>) target(%arg16 : memref<128x32xbf16, #tpu.memory_space<vmem>>) target_semaphore(%126 : memref<!tpu.dma_semaphore, #tpu.memory_space<semaphore_mem>>)
      %c0_i32_78 = arith.constant 0 : i32
      %127 = tpu.memref_slice %arg17[%c0_i32_78] : memref<4x!tpu.dma_semaphore, #tpu.memory_space<semaphore_mem>> -> memref<1x!tpu.dma_semaphore, #tpu.memory_space<semaphore_mem>>
      %128 = tpu.memref_squeeze %127 : memref<1x!tpu.dma_semaphore, #tpu.memory_space<semaphore_mem>> -> memref<!tpu.dma_semaphore, #tpu.memory_space<semaphore_mem>>
      tpu.wait_dma2 semaphore(%128 : memref<!tpu.dma_semaphore, #tpu.memory_space<semaphore_mem>>) src(%arg2 : memref<8x8x32xbf16, #tpu.memory_space<any>>) dst(%arg13 : memref<8x8x32xbf16, #tpu.memory_space<vmem>>)
      %c1_i32_79 = arith.constant 1 : i32
      %129 = tpu.memref_slice %arg17[%c1_i32_79] : memref<4x!tpu.dma_semaphore, #tpu.memory_space<semaphore_mem>> -> memref<1x!tpu.dma_semaphore, #tpu.memory_space<semaphore_mem>>
      %130 = tpu.memref_squeeze %129 : memref<1x!tpu.dma_semaphore, #tpu.memory_space<semaphore_mem>> -> memref<!tpu.dma_semaphore, #tpu.memory_space<semaphore_mem>>
      tpu.wait_dma2 semaphore(%130 : memref<!tpu.dma_semaphore, #tpu.memory_space<semaphore_mem>>) src(%arg3 : memref<8x4x32xbf16, #tpu.memory_space<any>>) dst(%arg14 : memref<8x4x32xbf16, #tpu.memory_space<vmem>>)
      %c2_i32_80 = arith.constant 2 : i32
      %131 = tpu.memref_slice %arg17[%c2_i32_80] : memref<4x!tpu.dma_semaphore, #tpu.memory_space<semaphore_mem>> -> memref<1x!tpu.dma_semaphore, #tpu.memory_space<semaphore_mem>>
      %132 = tpu.memref_squeeze %131 : memref<1x!tpu.dma_semaphore, #tpu.memory_space<semaphore_mem>> -> memref<!tpu.dma_semaphore, #tpu.memory_space<semaphore_mem>>
      tpu.wait_dma2 semaphore(%132 : memref<!tpu.dma_semaphore, #tpu.memory_space<semaphore_mem>>) src(%arg8 : memref<3x32x128xbf16, #tpu.memory_space<any>>) dst(%arg15 : memref<3x32x128xbf16, #tpu.memory_space<vmem>>)
      %c3_i32_81 = arith.constant 3 : i32
      %133 = tpu.memref_slice %arg17[%c3_i32_81] : memref<4x!tpu.dma_semaphore, #tpu.memory_space<semaphore_mem>> -> memref<1x!tpu.dma_semaphore, #tpu.memory_space<semaphore_mem>>
      %134 = tpu.memref_squeeze %133 : memref<1x!tpu.dma_semaphore, #tpu.memory_space<semaphore_mem>> -> memref<!tpu.dma_semaphore, #tpu.memory_space<semaphore_mem>>
      tpu.wait_dma2 semaphore(%134 : memref<!tpu.dma_semaphore, #tpu.memory_space<semaphore_mem>>) src(%arg9 : memref<128x32xbf16, #tpu.memory_space<any>>) dst(%arg16 : memref<128x32xbf16, #tpu.memory_space<vmem>>)
      %c0_82 = arith.constant 0 : index
      %c0_83 = arith.constant 0 : index
      %135 = vector.load %arg6[%c0_82, %c0_83] : memref<8x32xf32, #tpu.memory_space<vmem>>, vector<8x32xf32>
      %c0_84 = arith.constant 0 : index
      %c0_85 = arith.constant 0 : index
      %136 = vector.load %arg18[%c0_84, %c0_85] : memref<8x32xf32, #tpu.memory_space<vmem>>, vector<8x32xf32>
      tpu.vector_store %arg18[%c0_84, %c0_85], %135 {strides = array<i32>} : memref<8x32xf32, #tpu.memory_space<vmem>>, vector<8x32xf32>,
      %cst_86 = arith.constant 0.000000e+00 : f32
      %137 = vector.broadcast %cst_86 : f32 to vector<8x1x8xf32>
      %c0_87 = arith.constant 0 : index
      %c0_88 = arith.constant 0 : index
      %c0_89 = arith.constant 0 : index
      %138 = vector.load %arg19[%c0_87, %c0_88, %c0_89] : memref<8x1x8xf32, #tpu.memory_space<vmem>>, vector<8x1x8xf32>
      tpu.vector_store %arg19[%c0_87, %c0_88, %c0_89], %137 {strides = array<i32>} : memref<8x1x8xf32, #tpu.memory_space<vmem>>, vector<8x1x8xf32>,
      %cst_90 = arith.constant 0.000000e+00 : f32
      %139 = vector.broadcast %cst_90 : f32 to vector<8x1x4xf32>
      %c0_91 = arith.constant 0 : index
      %c0_92 = arith.constant 0 : index
      %c0_93 = arith.constant 0 : index
      %140 = vector.load %arg20[%c0_91, %c0_92, %c0_93] : memref<8x1x4xf32, #tpu.memory_space<vmem>>, vector<8x1x4xf32>
      tpu.vector_store %arg20[%c0_91, %c0_92, %c0_93], %139 {strides = array<i32>} : memref<8x1x4xf32, #tpu.memory_space<vmem>>, vector<8x1x4xf32>,
      %cst_94 = arith.constant 0.000000e+00 : f32
      %141 = vector.broadcast %cst_94 : f32 to vector<1x1x1xf32>
      %c0_95 = arith.constant 0 : index
      %c0_96 = arith.constant 0 : index
      %c0_97 = arith.constant 0 : index
      %142 = vector.load %arg12[%c0_95, %c0_96, %c0_97] : memref<1x1x1xf32, #tpu.memory_space<vmem>>, vector<1x1x1xf32>
      tpu.vector_store %arg12[%c0_95, %c0_96, %c0_97], %141 {strides = array<i32>} : memref<1x1x1xf32, #tpu.memory_space<vmem>>, vector<1x1x1xf32>,
    } else {
    }
    %3 = arith.sitofp %arg0 : i32 to f32
    %cst = arith.constant 1.000000e+01 : f32
    %4 = arith.addf %cst, %3 : f32
    %cst_1 = arith.constant 1.000000e+00 : f32
    %5 = arith.divf %cst_1, %4 : f32
    %c0 = arith.constant 0 : index
    %c0_2 = arith.constant 0 : index
    %6 = vector.load %arg18[%c0, %c0_2] : memref<8x32xf32, #tpu.memory_space<vmem>>, vector<8x32xf32>
    %7 = vector.broadcast %5 : f32 to vector<8x32xf32>
    %8 = arith.mulf %6, %7 : vector<8x32xf32>
    %9 = arith.truncf %8 : vector<8x32xf32> to vector<8x32xbf16>
    %10 = vector.shape_cast %9 : vector<8x32xbf16> to vector<8x1x32xbf16>
    %c0_3 = arith.constant 0 : index
    %c0_4 = arith.constant 0 : index
    %c0_5 = arith.constant 0 : index
    %11 = vector.load %arg13[%c0_3, %c0_4, %c0_5] : memref<8x8x32xbf16, #tpu.memory_space<vmem>>, vector<8x8x32xbf16>
    %c0_6 = arith.constant 0 : index
    %c0_7 = arith.constant 0 : index
    %c0_8 = arith.constant 0 : index
    %12 = vector.load %arg14[%c0_6, %c0_7, %c0_8] : memref<8x4x32xbf16, #tpu.memory_space<vmem>>, vector<8x4x32xbf16>
    %c0_9 = arith.constant 0 : index
    %c0_10 = arith.constant 0 : index
    %c0_11 = arith.constant 0 : index
    %13 = vector.load %arg4[%c0_9, %c0_10, %c0_11] : memref<8x1x8xf32, #tpu.memory_space<vmem>>, vector<8x1x8xf32>
    %c0_12 = arith.constant 0 : index
    %c0_13 = arith.constant 0 : index
    %c0_14 = arith.constant 0 : index
    %14 = vector.load %arg5[%c0_12, %c0_13, %c0_14] : memref<8x1x4xf32, #tpu.memory_space<vmem>>, vector<8x1x4xf32>
    "tpu.trace_start"() <{level = 10 : i32, message = "bqe,bte->bqt"}> : () -> ()
    %cst_15 = arith.constant dense<0.000000e+00> : vector<8x1x8xf32>
    %15 = tpu.matmul %10, %11, %cst_15 {dimension_numbers = #tpu.dot_dimension_numbers<[2], [2], [1], [1], [0, 0, 0, 1, 1, 1], [0], [0]>} : vector<8x1x32xbf16>, vector<8x8x32xbf16>, vector<8x1x8xf32> -> vector<8x1x8xf32>
    "tpu.trace_stop"() : () -> ()
    %cst_16 = arith.constant 1.000000e+00 : f32
    %16 = vector.broadcast %cst_16 : f32 to vector<8x1x8xf32>
    %17 = arith.subf %13, %16 : vector<8x1x8xf32>
    %cst_17 = arith.constant 1.000000e+09 : f32
    %18 = vector.broadcast %cst_17 : f32 to vector<8x1x8xf32>
    %19 = arith.mulf %17, %18 : vector<8x1x8xf32>
    %20 = arith.addf %15, %19 : vector<8x1x8xf32>
    %cst_18 = arith.constant dense<0xFF800000> : vector<8x1xf32>
    %21 = vector.multi_reduction <maximumf>, %20, %cst_18 [2] : vector<8x1x8xf32> to vector<8x1xf32>
    %22 = vector.shape_cast %21 : vector<8x1xf32> to vector<8x1x1xf32>
    %23 = vector.broadcast %22 : vector<8x1x1xf32> to vector<8x1x8xf32>
    %24 = arith.subf %20, %23 : vector<8x1x8xf32>
    %25 = math.exp %24 : vector<8x1x8xf32>
    %26 = arith.mulf %25, %13 : vector<8x1x8xf32>
    %cst_19 = arith.constant dense<0.000000e+00> : vector<8x1xf32>
    %27 = vector.multi_reduction <add>, %26, %cst_19 [2] : vector<8x1x8xf32> to vector<8x1xf32>
    %28 = vector.shape_cast %27 : vector<8x1xf32> to vector<8x1x1xf32>
    %cst_20 = arith.constant 9.99999971E-10 : f32
    %29 = vector.broadcast %cst_20 : f32 to vector<8x1x1xf32>
    %30 = arith.addf %28, %29 : vector<8x1x1xf32>
    %31 = tpu.reciprocal %30 {approx = true} : vector<8x1x1xf32> -> vector<8x1x1xf32>
    %32 = vector.broadcast %31 : vector<8x1x1xf32> to vector<8x1x8xf32>
    %33 = arith.mulf %26, %32 : vector<8x1x8xf32>
    "tpu.trace_start"() <{level = 10 : i32, message = "bqe,bke->bqk"}> : () -> ()
    %cst_21 = arith.constant dense<0.000000e+00> : vector<8x1x4xf32>
    %34 = tpu.matmul %10, %12, %cst_21 {dimension_numbers = #tpu.dot_dimension_numbers<[2], [2], [1], [1], [0, 0, 0, 1, 1, 1], [0], [0]>} : vector<8x1x32xbf16>, vector<8x4x32xbf16>, vector<8x1x4xf32> -> vector<8x1x4xf32>
    "tpu.trace_stop"() : () -> ()
    %cst_22 = arith.constant 1.000000e+00 : f32
    %35 = vector.broadcast %cst_22 : f32 to vector<8x1x4xf32>
    %36 = arith.subf %14, %35 : vector<8x1x4xf32>
    %cst_23 = arith.constant 1.000000e+09 : f32
    %37 = vector.broadcast %cst_23 : f32 to vector<8x1x4xf32>
    %38 = arith.mulf %36, %37 : vector<8x1x4xf32>
    %39 = arith.addf %34, %38 : vector<8x1x4xf32>
    %cst_24 = arith.constant dense<0xFF800000> : vector<8x1xf32>
    %40 = vector.multi_reduction <maximumf>, %39, %cst_24 [2] : vector<8x1x4xf32> to vector<8x1xf32>
    %41 = vector.shape_cast %40 : vector<8x1xf32> to vector<8x1x1xf32>
    %42 = vector.broadcast %41 : vector<8x1x1xf32> to vector<8x1x4xf32>
    %43 = arith.subf %39, %42 : vector<8x1x4xf32>
    %44 = math.exp %43 : vector<8x1x4xf32>
    %45 = arith.mulf %44, %14 : vector<8x1x4xf32>
    %cst_25 = arith.constant dense<0.000000e+00> : vector<8x1xf32>
    %46 = vector.multi_reduction <add>, %45, %cst_25 [2] : vector<8x1x4xf32> to vector<8x1xf32>
    %47 = vector.shape_cast %46 : vector<8x1xf32> to vector<8x1x1xf32>
    %cst_26 = arith.constant 9.99999971E-10 : f32
    %48 = vector.broadcast %cst_26 : f32 to vector<8x1x1xf32>
    %49 = arith.addf %47, %48 : vector<8x1x1xf32>
    %50 = tpu.reciprocal %49 {approx = true} : vector<8x1x1xf32> -> vector<8x1x1xf32>
    %51 = vector.broadcast %50 : vector<8x1x1xf32> to vector<8x1x4xf32>
    %52 = arith.mulf %45, %51 : vector<8x1x4xf32>
    %c0_27 = arith.constant 0 : index
    %c0_28 = arith.constant 0 : index
    %c0_29 = arith.constant 0 : index
    %53 = vector.load %arg19[%c0_27, %c0_28, %c0_29] : memref<8x1x8xf32, #tpu.memory_space<vmem>>, vector<8x1x8xf32>
    %c0_30 = arith.constant 0 : index
    %c0_31 = arith.constant 0 : index
    %c0_32 = arith.constant 0 : index
    %54 = vector.load %arg20[%c0_30, %c0_31, %c0_32] : memref<8x1x4xf32, #tpu.memory_space<vmem>>, vector<8x1x4xf32>
    %55 = arith.minimumf %33, %53 : vector<8x1x8xf32>
    %cst_33 = arith.constant dense<0.000000e+00> : vector<8x1xf32>
    %56 = vector.multi_reduction <add>, %55, %cst_33 [2] : vector<8x1x8xf32> to vector<8x1xf32>
    %57 = vector.shape_cast %56 : vector<8x1xf32> to vector<8x1x1xf32>
    %58 = arith.minimumf %52, %54 : vector<8x1x4xf32>
    %cst_34 = arith.constant dense<0.000000e+00> : vector<8x1xf32>
    %59 = vector.multi_reduction <add>, %58, %cst_34 [2] : vector<8x1x4xf32> to vector<8x1xf32>
    %60 = vector.shape_cast %59 : vector<8x1xf32> to vector<8x1x1xf32>
    %61 = arith.addf %57, %60 : vector<8x1x1xf32>
    %c0_35 = arith.constant 0 : index
    %c0_36 = arith.constant 0 : index
    %c0_37 = arith.constant 0 : index
    %62 = vector.load %arg12[%c0_35, %c0_36, %c0_37] : memref<1x1x1xf32, #tpu.memory_space<vmem>>, vector<1x1x1xf32>
    %cst_38 = arith.constant dense<0.000000e+00> : vector<1x1xf32>
    %63 = vector.multi_reduction <add>, %61, %cst_38 [0] : vector<8x1x1xf32> to vector<1x1xf32>
    %64 = vector.shape_cast %63 : vector<1x1xf32> to vector<1x1x1xf32>
    %65 = arith.addf %62, %64 : vector<1x1x1xf32>
    %c0_39 = arith.constant 0 : index
    %c0_40 = arith.constant 0 : index
    %c0_41 = arith.constant 0 : index
    %66 = vector.load %arg12[%c0_39, %c0_40, %c0_41] : memref<1x1x1xf32, #tpu.memory_space<vmem>>, vector<1x1x1xf32>
    tpu.vector_store %arg12[%c0_39, %c0_40, %c0_41], %65 {strides = array<i32>} : memref<1x1x1xf32, #tpu.memory_space<vmem>>, vector<1x1x1xf32>,
    %67 = arith.addf %53, %33 : vector<8x1x8xf32>
    %c0_42 = arith.constant 0 : index
    %c0_43 = arith.constant 0 : index
    %c0_44 = arith.constant 0 : index
    %68 = vector.load %arg19[%c0_42, %c0_43, %c0_44] : memref<8x1x8xf32, #tpu.memory_space<vmem>>, vector<8x1x8xf32>
    tpu.vector_store %arg19[%c0_42, %c0_43, %c0_44], %67 {strides = array<i32>} : memref<8x1x8xf32, #tpu.memory_space<vmem>>, vector<8x1x8xf32>,
    %69 = arith.addf %54, %52 : vector<8x1x4xf32>
    %c0_45 = arith.constant 0 : index
    %c0_46 = arith.constant 0 : index
    %c0_47 = arith.constant 0 : index
    %70 = vector.load %arg20[%c0_45, %c0_46, %c0_47] : memref<8x1x4xf32, #tpu.memory_space<vmem>>, vector<8x1x4xf32>
    tpu.vector_store %arg20[%c0_45, %c0_46, %c0_47], %69 {strides = array<i32>} : memref<8x1x4xf32, #tpu.memory_space<vmem>>, vector<8x1x4xf32>,
    %71 = arith.truncf %33 : vector<8x1x8xf32> to vector<8x1x8xbf16>
    "tpu.trace_start"() <{level = 10 : i32, message = "bqt,bte->bqe"}> : () -> ()
    %cst_48 = arith.constant dense<0.000000e+00> : vector<8x1x32xf32>
    %72 = tpu.matmul %71, %11, %cst_48 {dimension_numbers = #tpu.dot_dimension_numbers<[2], [1], [1], [2], [0, 0, 0, 1, 1, 2], [0], [0]>} : vector<8x1x8xbf16>, vector<8x8x32xbf16>, vector<8x1x32xf32> -> vector<8x1x32xf32>
    "tpu.trace_stop"() : () -> ()
    %73 = vector.shape_cast %72 : vector<8x1x32xf32> to vector<8x32xf32>
    %74 = arith.truncf %52 : vector<8x1x4xf32> to vector<8x1x4xbf16>
    "tpu.trace_start"() <{level = 10 : i32, message = "bqk,bke->bqe"}> : () -> ()
    %cst_49 = arith.constant dense<0.000000e+00> : vector<8x1x32xf32>
    %75 = tpu.matmul %74, %12, %cst_49 {dimension_numbers = #tpu.dot_dimension_numbers<[2], [1], [1], [2], [0, 0, 0, 1, 1, 2], [0], [0]>} : vector<8x1x4xbf16>, vector<8x4x32xbf16>, vector<8x1x32xf32> -> vector<8x1x32xf32>
    "tpu.trace_stop"() : () -> ()
    %76 = vector.shape_cast %75 : vector<8x1x32xf32> to vector<8x32xf32>
    %c0_50 = arith.constant 0 : index
    %c0_51 = arith.constant 0 : index
    %c0_52 = arith.constant 0 : index
    %77 = vector.load %arg15[%c0_50, %c0_51, %c0_52] : memref<3x32x128xbf16, #tpu.memory_space<vmem>>, vector<1x32x128xbf16>
    %78 = vector.shape_cast %77 : vector<1x32x128xbf16> to vector<32x128xbf16>
    %cst_53 = arith.constant dense<0.000000e+00> : vector<8x128xf32>
    %79 = tpu.matmul %9, %78, %cst_53 {dimension_numbers = #tpu.dot_dimension_numbers<[1], [0], [0], [1], [0, 0, 1, 1], [], []>} : vector<8x32xbf16>, vector<32x128xbf16>, vector<8x128xf32> -> vector<8x128xf32>
    %80 = arith.truncf %73 : vector<8x32xf32> to vector<8x32xbf16>
    %c1 = arith.constant 1 : index
    %c0_54 = arith.constant 0 : index
    %c0_55 = arith.constant 0 : index
    %81 = vector.load %arg15[%c1, %c0_54, %c0_55] : memref<3x32x128xbf16, #tpu.memory_space<vmem>>, vector<1x32x128xbf16>
    %82 = vector.shape_cast %81 : vector<1x32x128xbf16> to vector<32x128xbf16>
    %cst_56 = arith.constant dense<0.000000e+00> : vector<8x128xf32>
    %83 = tpu.matmul %80, %82, %cst_56 {dimension_numbers = #tpu.dot_dimension_numbers<[1], [0], [0], [1], [0, 0, 1, 1], [], []>} : vector<8x32xbf16>, vector<32x128xbf16>, vector<8x128xf32> -> vector<8x128xf32>
    %84 = arith.addf %79, %83 : vector<8x128xf32>
    %85 = arith.truncf %76 : vector<8x32xf32> to vector<8x32xbf16>
    %c2 = arith.constant 2 : index
    %c0_57 = arith.constant 0 : index
    %c0_58 = arith.constant 0 : index
    %86 = vector.load %arg15[%c2, %c0_57, %c0_58] : memref<3x32x128xbf16, #tpu.memory_space<vmem>>, vector<1x32x128xbf16>
    %87 = vector.shape_cast %86 : vector<1x32x128xbf16> to vector<32x128xbf16>
    %cst_59 = arith.constant dense<0.000000e+00> : vector<8x128xf32>
    %88 = tpu.matmul %85, %87, %cst_59 {dimension_numbers = #tpu.dot_dimension_numbers<[1], [0], [0], [1], [0, 0, 1, 1], [], []>} : vector<8x32xbf16>, vector<32x128xbf16>, vector<8x128xf32> -> vector<8x128xf32>
    %89 = arith.addf %84, %88 : vector<8x128xf32>
    %c0_60 = arith.constant 0 : index
    %c0_61 = arith.constant 0 : index
    %90 = vector.load %arg10[%c0_60, %c0_61] : memref<1x128xf32, #tpu.memory_space<vmem>>, vector<1x128xf32>
    %91 = vector.broadcast %90 : vector<1x128xf32> to vector<8x128xf32>
    %92 = arith.addf %89, %91 : vector<8x128xf32>
    %cst_62 = arith.constant dense<0xFF800000> : vector<8xf32>
    %93 = vector.multi_reduction <maximumf>, %92, %cst_62 [1] : vector<8x128xf32> to vector<8xf32>
    %94 = vector.shape_cast %93 : vector<8xf32> to vector<8x1xf32>
    %95 = vector.broadcast %94 : vector<8x1xf32> to vector<8x128xf32>
    %96 = arith.subf %92, %95 : vector<8x128xf32>
    %97 = math.exp %96 : vector<8x128xf32>
    %cst_63 = arith.constant dense<0.000000e+00> : vector<8xf32>
    %98 = vector.multi_reduction <add>, %97, %cst_63 [1] : vector<8x128xf32> to vector<8xf32>
    %99 = vector.shape_cast %98 : vector<8xf32> to vector<8x1xf32>
    %100 = vector.broadcast %99 : vector<8x1xf32> to vector<8x128xf32>
    %101 = arith.divf %97, %100 : vector<8x128xf32>
    %c0_64 = arith.constant 0 : index
    %c0_65 = arith.constant 0 : index
    %c0_66 = arith.constant 0 : index
    %102 = vector.load %arg11[%c0_64, %c0_65, %c0_66] : memref<1x8x128xf32, #tpu.memory_space<vmem>>, vector<1x8x128xf32>
    %103 = vector.shape_cast %102 : vector<1x8x128xf32> to vector<8x128xf32>
    %104 = vector.shape_cast %101 : vector<8x128xf32> to vector<1x8x128xf32>
    tpu.vector_store %arg11[%c0_64, %c0_65, %c0_66], %104 {strides = array<i32>} : memref<1x8x128xf32, #tpu.memory_space<vmem>>, vector<1x8x128xf32>,
    %105 = arith.index_cast %arg0 : i32 to index
    %106 = memref.load %arg1[%105] : memref<6xi32, #tpu.memory_space<smem>>
    %c1_i32 = arith.constant 1 : i32
    %107 = arith.cmpi eq, %106, %c1_i32 : i32
    %108 = arith.extui %107 : i1 to i32
    %c0_i32_67 = arith.constant 0 : i32
    %109 = arith.cmpi ne, %108, %c0_i32_67 : i32
    scf.if %109 {
      %c0_76 = arith.constant 0 : index
      %c0_77 = arith.constant 0 : index
      %c0_78 = arith.constant 0 : index
      %119 = vector.load %arg7[%c0_76, %c0_77, %c0_78] : memref<1x8x32xf32, #tpu.memory_space<vmem>>, vector<1x8x32xf32>
      %120 = vector.shape_cast %119 : vector<1x8x32xf32> to vector<8x32xf32>
      %c0_79 = arith.constant 0 : index
      %c0_80 = arith.constant 0 : index
      %121 = vector.load %arg21[%c0_79, %c0_80] : memref<8x32xf32, #tpu.memory_space<vmem>>, vector<8x32xf32>
      tpu.vector_store %arg21[%c0_79, %c0_80], %120 {strides = array<i32>} : memref<8x32xf32, #tpu.memory_space<vmem>>, vector<8x32xf32>,
    } else {
    }
    %110 = arith.index_cast %arg0 : i32 to index
    %111 = memref.load %arg1[%110] : memref<6xi32, #tpu.memory_space<smem>>
    %c0_i32_68 = arith.constant 0 : i32
    %112 = arith.cmpi eq, %111, %c0_i32_68 : i32
    %113 = arith.extui %112 : i1 to i32
    %c0_i32_69 = arith.constant 0 : i32
    %114 = arith.cmpi ne, %113, %c0_i32_69 : i32
    scf.if %114 {
      %119 = tpu.iota {dimensions = array<i32: 1>} : vector<8x128xi32>
      %cst_76 = arith.constant dense<0xFF800000> : vector<8xf32>
      %120 = vector.multi_reduction <maximumf>, %101, %cst_76 [1] : vector<8x128xf32> to vector<8xf32>
      %121 = vector.shape_cast %120 : vector<8xf32> to vector<8x1xf32>
      %122 = vector.broadcast %121 : vector<8x1xf32> to vector<8x128xf32>
      %123 = arith.cmpf oge, %101, %122 : vector<8x128xf32>
      %c128_i32 = arith.constant 128 : i32
      %124 = vector.broadcast %c128_i32 : i32 to vector<8x128xi32>
      %125 = arith.select %123, %119, %124 : vector<8x128xi1>, vector<8x128xi32>
      %cst_77 = arith.constant dense<2147483647> : vector<8xi32>
      %126 = vector.multi_reduction <minsi>, %125, %cst_77 [1] : vector<8x128xi32> to vector<8xi32>
      %127 = vector.shape_cast %126 : vector<8xi32> to vector<8x1xi32>
      %128 = vector.broadcast %127 : vector<8x1xi32> to vector<8x128xi32>
      %129 = arith.cmpi eq, %119, %128 : vector<8x128xi32>
      %130 = arith.extui %129 : vector<8x128xi1> to vector<8x128xi32>
      %131 = arith.sitofp %130 : vector<8x128xi32> to vector<8x128xf32>
      %132 = arith.truncf %131 : vector<8x128xf32> to vector<8x128xbf16>
      %c0_78 = arith.constant 0 : index
      %c0_79 = arith.constant 0 : index
      %133 = vector.load %arg16[%c0_78, %c0_79] : memref<128x32xbf16, #tpu.memory_space<vmem>>, vector<128x32xbf16>
      %cst_80 = arith.constant dense<0.000000e+00> : vector<8x32xf32>
      %134 = tpu.matmul %132, %133, %cst_80 {dimension_numbers = #tpu.dot_dimension_numbers<[1], [0], [0], [1], [0, 0, 1, 1], [], []>} : vector<8x128xbf16>, vector<128x32xbf16>, vector<8x32xf32> -> vector<8x32xf32>
      %c0_81 = arith.constant 0 : index
      %c0_82 = arith.constant 0 : index
      %135 = vector.load %arg21[%c0_81, %c0_82] : memref<8x32xf32, #tpu.memory_space<vmem>>, vector<8x32xf32>
      tpu.vector_store %arg21[%c0_81, %c0_82], %134 {strides = array<i32>} : memref<8x32xf32, #tpu.memory_space<vmem>>, vector<8x32xf32>,
    } else {
    }
    %c0_70 = arith.constant 0 : index
    %c0_71 = arith.constant 0 : index
    %115 = vector.load %arg18[%c0_70, %c0_71] : memref<8x32xf32, #tpu.memory_space<vmem>>, vector<8x32xf32>
    %c0_72 = arith.constant 0 : index
    %c0_73 = arith.constant 0 : index
    %116 = vector.load %arg21[%c0_72, %c0_73] : memref<8x32xf32, #tpu.memory_space<vmem>>, vector<8x32xf32>
    %117 = arith.addf %115, %116 : vector<8x32xf32>
    %c0_74 = arith.constant 0 : index
    %c0_75 = arith.constant 0 : index
    %118 = vector.load %arg18[%c0_74, %c0_75] : memref<8x32xf32, #tpu.memory_space<vmem>>, vector<8x32xf32>
    tpu.vector_store %arg18[%c0_74, %c0_75], %117 {strides = array<i32>} : memref<8x32xf32, #tpu.memory_space<vmem>>, vector<8x32xf32>,
    return
  }
  func.func @transform_2(%arg0: i32, %arg1: memref<6xi32, #tpu.memory_space<smem>>) -> (i32, i32, i32) {
    %c0_i32 = arith.constant 0 : i32
    %c0_i32_0 = arith.constant 0 : i32
    %c0_i32_1 = arith.constant 0 : i32
    %c0_i32_2 = arith.constant 0 : i32
    return %c0_i32, %c0_i32_0, %c0_i32_1 : i32, i32, i32
  }
  func.func @transform_3(%arg0: i32, %arg1: memref<6xi32, #tpu.memory_space<smem>>) -> (i32, i32, i32) {
    %c0_i32 = arith.constant 0 : i32
    %c0_i32_0 = arith.constant 0 : i32
    %c0_i32_1 = arith.constant 0 : i32
    %c0_i32_2 = arith.constant 0 : i32
    return %c0_i32, %c0_i32_0, %c0_i32_1 : i32, i32, i32
  }
  func.func @transform_4(%arg0: i32, %arg1: memref<6xi32, #tpu.memory_space<smem>>) -> (i32, i32) {
    %c0_i32 = arith.constant 0 : i32
    %c0_i32_0 = arith.constant 0 : i32
    %c0_i32_1 = arith.constant 0 : i32
    return %c0_i32, %c0_i32_0 : i32, i32
  }
  func.func @transform_5(%arg0: i32, %arg1: memref<6xi32, #tpu.memory_space<smem>>) -> (i32, i32, i32) {
    %c0_i32 = arith.constant 0 : i32
    %c0_i32_0 = arith.constant 0 : i32
    %c0_i32_1 = arith.constant 0 : i32
    return %arg0, %c0_i32, %c0_i32_0 : i32, i32, i32
  }
  func.func @transform_8(%arg0: i32, %arg1: memref<6xi32, #tpu.memory_space<smem>>) -> (i32, i32) {
    %c0_i32 = arith.constant 0 : i32
    %c0_i32_0 = arith.constant 0 : i32
    %c0_i32_1 = arith.constant 0 : i32
    return %c0_i32, %c0_i32_0 : i32, i32
  }
  func.func @transform_9(%arg0: i32, %arg1: memref<6xi32, #tpu.memory_space<smem>>) -> (i32, i32, i32) {
    %c0_i32 = arith.constant 0 : i32
    %c0_i32_0 = arith.constant 0 : i32
    %c0_i32_1 = arith.constant 0 : i32
    return %arg0, %c0_i32, %c0_i32_0 : i32, i32, i32
  }
  func.func @transform_10(%arg0: i32, %arg1: memref<6xi32, #tpu.memory_space<smem>>) -> (i32, i32, i32) {
    %c0_i32 = arith.constant 0 : i32
    %c0_i32_0 = arith.constant 0 : i32
    %c0_i32_1 = arith.constant 0 : i32
    %c0_i32_2 = arith.constant 0 : i32
    return %c0_i32, %c0_i32_0, %c0_i32_1 : i32, i32, i32
  }
}

</mosaic_0001>

<bundles_post_ra>
// kernel: _seq2seq_impl.1
= control target key start
LH: loop header
LB: loop body
LE: loop exit
PB: predicated region body
PF: predicated region fallthrough
CT: control target
= control target key end

     0   :  { %s4528_s0 = inlined_call_operand.vmem [shape: s32[6], index: 0, kind: input, shape index: {}]   ;;  %s4529_s1 = inlined_call_operand.vmem [shape: bf16[8,8,32], index: 1, kind: input, shape index: {}]   ;;  %s4530_s2 = inlined_call_operand.vmem [shape: bf16[8,4,32], index: 2, kind: input, shape index: {}]   ;;  %s4531_s3 = inlined_call_operand.vmem [shape: f32[8,1,8], index: 3, kind: input, shape index: {}]   ;;  %s4532_s4 = inlined_call_operand.vmem [shape: f32[8,1,4], index: 4, kind: input, shape index: {}]   ;;  %s4533_s5 = inlined_call_operand.vmem [shape: f32[8,32], index: 5, kind: input, shape index: {}]   ;;  %s4534_s6 = inlined_call_operand.vmem [shape: f32[6,8,32], index: 6, kind: input, shape index: {}]   ;;  %s4535_s7 = inlined_call_operand.vmem [shape: bf16[3,32,128], index: 7, kind: input, shape index: {}]   ;;  %s4536_s8 = inlined_call_operand.vmem [shape: bf16[128,32], index: 8, kind: input, shape index: {}]   ;;  %s4537_s9 = inlined_call_operand.vmem [shape: f32[1,128], index: 9, kind: input, shape index: {}]   ;;  %s4538_s10 = inlined_call_operand.vmem [shape: f32[6,8,128], index: 10, kind: output, shape index: {0}]   ;;  %s4539_s11 = inlined_call_operand.hbm [shape: f32[1,1,1], index: 11, kind: output, shape index: {1}]  }
   0x1   :  { %s17_s19 = sshll.u32 %s4528_s0, 4  ;;  %s18_s19 = int_to_ptr.vmem [resolvable:$true] %s17_s19 }
   0x2   :  { %s3545_s20 = scalar_lea.vmem %s18_s19, 16  ;;  %p3550_p1 = scmp.lt.s32.totalorder %s18_s19, %s18_s19 }
   0x3   :  { %p3546_p0 = scmp.ne.s32.totalorder %s18_s19, %s3545_s20  ;;  %p3551_p2 = scmp.lt.s32.totalorder %s3545_s20, %s3545_s20 }
   0x5   :  { %p3552_p3 = por %p3551_p2, %p3550_p1 }
   0x7   :  { %p3553_p4 = pnand %p3552_p3, %p3546_p0 }
   0x9   :  { %3556 = shalt.err (!%p3553_p4)  }
   0xa   :  { %s3603_s21 = smov [#allocation12]  }
   0xb   :  { %20 = dma.vmem_to_smem %s18_s19, 16, %s3603_s21, [#allocation11] }
   0xc   :  { %3585 = dma.done.wait [#allocation11], 16 }
   0xd   :  { %3586 = vsyncadd [#allocation11], 4294967280 }
   0xe   :  { %22 = sfence }
   0xf   :  { %23 = vsyncpa [#allocation14], 0  ;;  %s3675_s22 = smov 0  }
  0x10 LB: > { %s3681_s0 = sadd.s32 4294967295, %s3601_s22   ;;  %p3028_p5 = scmp.ge.s32.totalorder %s3601_s22, 1  ;;  %s3601_s22 = sphi %s3675_s22, %s29_s22  }
  0x11   : > { %p221_p6 = scmp.lt.s32.totalorder %s3601_s22, 7 }
  0x13   : > { %p222_p7 = pnand %p3028_p5, %p221_p6 }
  0x14   : > { %p249_p8 = scmp.lt.s32.totalorder (!%p222_p7), %s3681_s0, 5  ;;  %p3031_p9 = scmp.ne.s32.totalorder (!%p222_p7), %s3681_s0, 0 }
  0x15   : > { %225 = sbr.rel (%p222_p7) target bundleno = 2090 (0x82a), region = 40 }
  0x1a   : > { %s250_s23 = scalar_select %p249_p8, %s3681_s0, 5 }
  0x1b   : > { %261 = sbr.rel (%p3031_p9) target bundleno = 65 (0x41), region = 44 }
  0x1c   : > { %s3029_s24 = sshll.u32 %s250_s23, 3 }
  0x1d   : > { %s3690_s27 = scalar_lea.vmem %s4534_s6, %s3029_s24  ;;  %s3695_s30 = scalar_lea.vmem %s4538_s10, %s3029_s24 }
  0x20   : > { %v295_v0 = vld [vmem:[%s4529_s1] sm:$0xff]  ;;  %v297_v1 = vld [vmem:[%s4529_s1 + $0x8] sm:$0xff]  ;;  %v299_v2 = vld [vmem:[%s4529_s1 + $0x10] sm:$0xff] }
  0x21   : > { %296 = vst [vmem:[#allocation2] sm:$0xff] %v295_v0  ;;  %298 = vst [vmem:[#allocation2 + $0x8] sm:$0xff] %v297_v1  ;;  %v301_v3 = vld [vmem:[%s4529_s1 + $0x18] sm:$0xff] }
  0x22   : > { %300 = vst [vmem:[#allocation2 + $0x10] sm:$0xff] %v299_v2  ;;  %302 = vst [vmem:[#allocation2 + $0x18] sm:$0xff] %v301_v3 }
  0x23   : > { %310 = vsyncadd [#allocation6], 512  ;;  %v345_v4 = vld [vmem:[%s4530_s2] sm:$0xff]  ;;  %v347_v5 = vld [vmem:[%s4530_s2 + $0x8] sm:$0xff] }
  0x24   : > { %346 = vst [vmem:[#allocation3] sm:$0xff] %v345_v4  ;;  %348 = vst [vmem:[#allocation3 + $0x8] sm:$0xff] %v347_v5 }
  0x25   : > { %356 = vsyncadd [#allocation6 + $0x1], 256  ;;  %v391_v6 = vld [vmem:[%s4535_s7] sm:$0xff]  ;;  %v393_v7 = vld [vmem:[%s4535_s7 + $0x8] sm:$0xff] }
  0x26   : > { %392 = vst [vmem:[#allocation4] sm:$0xff] %v391_v6  ;;  %394 = vst [vmem:[#allocation4 + $0x8] sm:$0xff] %v393_v7  ;;  %v395_v8 = vld [vmem:[%s4535_s7 + $0x10] sm:$0xff]  ;;  %v397_v9 = vld [vmem:[%s4535_s7 + $0x18] sm:$0xff] }
  0x27   : > { %v399_v10 = vld [vmem:[%s4535_s7 + $0x20] sm:$0xff]  ;;  %396 = vst [vmem:[#allocation4 + $0x10] sm:$0xff] %v395_v8  ;;  %398 = vst [vmem:[#allocation4 + $0x18] sm:$0xff] %v397_v9  ;;  %v401_v11 = vld [vmem:[%s4535_s7 + $0x28] sm:$0xff] }
  0x28   : > { %400 = vst [vmem:[#allocation4 + $0x20] sm:$0xff] %v399_v10  ;;  %402 = vst [vmem:[#allocation4 + $0x28] sm:$0xff] %v401_v11 }
  0x29   : > { %410 = vsyncadd [#allocation6 + $0x2], 768  ;;  %v445_v12 = vld [vmem:[%s4536_s8] sm:$0xff]  ;;  %v447_v13 = vld [vmem:[%s4536_s8 + $0x8] sm:$0xff] }
  0x2a   : > { %446 = vst [vmem:[#allocation5] sm:$0xff] %v445_v12  ;;  %448 = vst [vmem:[#allocation5 + $0x8] sm:$0xff] %v447_v13  ;;  %v449_v14 = vld [vmem:[%s4536_s8 + $0x10] sm:$0xff]  ;;  %v451_v15 = vld [vmem:[%s4536_s8 + $0x18] sm:$0xff] }
  0x2b   : > { %v453_v16 = vld [vmem:[%s4536_s8 + $0x20] sm:$0xff]  ;;  %450 = vst [vmem:[#allocation5 + $0x10] sm:$0xff] %v449_v14  ;;  %452 = vst [vmem:[#allocation5 + $0x18] sm:$0xff] %v451_v15  ;;  %v455_v17 = vld [vmem:[%s4536_s8 + $0x28] sm:$0xff] }
  0x2c   : > { %454 = vst [vmem:[#allocation5 + $0x20] sm:$0xff] %v453_v16  ;;  %v457_v18 = vld [vmem:[%s4536_s8 + $0x30] sm:$0xff]  ;;  %v459_v19 = vld [vmem:[%s4536_s8 + $0x38] sm:$0xff]  ;;  %456 = vst [vmem:[#allocation5 + $0x28] sm:$0xff] %v455_v17 }
  0x2d   : > { %458 = vst [vmem:[#allocation5 + $0x30] sm:$0xff] %v457_v18  ;;  %460 = vst [vmem:[#allocation5 + $0x38] sm:$0xff] %v459_v19 }
  0x2e   : > { %468 = vsyncadd [#allocation6 + $0x3], 1024 }
  0x2f   : > { %3587 = dma.done.wait [#allocation6], 512 }
  0x30   : > { %3588 = vsyncadd [#allocation6], 4294966784 }
  0x31   : > { %3589 = dma.done.wait [#allocation6 + $0x1], 256 }
  0x32   : > { %3590 = vsyncadd [#allocation6 + $0x1], 4294967040 }
  0x33   : > { %3591 = dma.done.wait [#allocation6 + $0x2], 768 }
  0x34   : > { %3592 = vsyncadd [#allocation6 + $0x2], 4294966528 }
  0x35   : > { %3593 = dma.done.wait [#allocation6 + $0x3], 1024 }
  0x36   : > { %3594 = vsyncadd [#allocation6 + $0x3], 4294966272  ;;  %vm491_vm0 = vcmask 57344   ;;  %vm500_vm1 = vcmask 24576   ;;  %v3604_v20 = vmov 0.0   ;;  %vm509_vm2 = vcmask 0  }
  0x37   : > { %492 = vst.msk [vmem:[#allocation8] sm:$0x1] %vm491_vm0, %v3604_v20  ;;  %493 = vst.msk [vmem:[#allocation8 + $0x1] sm:$0x1] %vm491_vm0, %v3604_v20  ;;  %vm489_vm3 = vcmask 261120   ;;  %v488_v21 = vld [vmem:[%s4533_s5] sm:$0xff] }
  0x38   : > { %494 = vst.msk [vmem:[#allocation8 + $0x2] sm:$0x1] %vm491_vm0, %v3604_v20  ;;  %495 = vst.msk [vmem:[#allocation8 + $0x3] sm:$0x1] %vm491_vm0, %v3604_v20 }
  0x39   : > { %496 = vst.msk [vmem:[#allocation8 + $0x4] sm:$0x1] %vm491_vm0, %v3604_v20  ;;  %497 = vst.msk [vmem:[#allocation8 + $0x5] sm:$0x1] %vm491_vm0, %v3604_v20 }
  0x3a   : > { %498 = vst.msk [vmem:[#allocation8 + $0x6] sm:$0x1] %vm491_vm0, %v3604_v20  ;;  %499 = vst.msk [vmem:[#allocation8 + $0x7] sm:$0x1] %vm491_vm0, %v3604_v20 }
  0x3b   : > { %501 = vst.msk [vmem:[#allocation9] sm:$0x1] %vm500_vm1, %v3604_v20  ;;  %502 = vst.msk [vmem:[#allocation9 + $0x1] sm:$0x1] %vm500_vm1, %v3604_v20 }
  0x3c   : > { %503 = vst.msk [vmem:[#allocation9 + $0x2] sm:$0x1] %vm500_vm1, %v3604_v20  ;;  %504 = vst.msk [vmem:[#allocation9 + $0x3] sm:$0x1] %vm500_vm1, %v3604_v20 }
  0x3d   : > { %505 = vst.msk [vmem:[#allocation9 + $0x4] sm:$0x1] %vm500_vm1, %v3604_v20  ;;  %506 = vst.msk [vmem:[#allocation9 + $0x5] sm:$0x1] %vm500_vm1, %v3604_v20 }
  0x3e   : > { %507 = vst.msk [vmem:[#allocation9 + $0x6] sm:$0x1] %vm500_vm1, %v3604_v20  ;;  %508 = vst.msk [vmem:[#allocation9 + $0x7] sm:$0x1] %vm500_vm1, %v3604_v20 }
  0x3f   : > { %510 = vst.msk [vmem:[#allocation13] sm:$0x1] %vm509_vm2, %v3604_v20 }
  0x40   : > { %490 = vst.msk [vmem:[#allocation7] sm:$0xff] %vm489_vm3, %v488_v21 }
  0x41 PF: > { %s511_s23 = scvt.s32.f32 %s3681_s0  ;;  %v3770_v22 = vld [vmem:[#allocation2] sm:$0xf]  ;;  %v3605_v23 = vmov 0.0   ;;  %vm606_vm4 = vcmask 261120   ;;  %v3774_v24 = vld [vmem:[#allocation2 + $0x4] sm:$0xf]  ;;  %v524_v31 = vlaneseq }
  0x42   : > { %3197 = vmatprep.subr.bf16.mxu0 %v3605_v23  ;;  %3203 = vmatprep.subr.bf16.mxu1 %v3605_v23  ;;  %v611_v25 = vsel %vm606_vm4, %v3770_v22, 0  ;;  %v662_v26 = vsel %vm606_vm4, %v3774_v24, 0  ;;  %vm3606_vm5 = vmmov 0   ;;  %v3607_v29 = vmov 1966171168   ;;  %s4495_s29 = sld [smem:[#allocation12 + %s3681_s0]] }
  0x43   : > { %s512_s24 = sadd.f32 10.0, %s511_s23  ;;  %3199 = vmatprep.mubr.msk.bf16.mxu0 %vm3606_vm5, %v3605_v23  ;;  %3205 = vmatprep.mubr.msk.bf16.mxu1 %vm3606_vm5, %v3605_v23  ;;  %v522_v30 = vunpack.c.l.s4 %v3607_v29  ;;  %v525_v33 = vshrl.u32 %v524_v31, 7  ;;  %v3792_v45 = vld [vmem:[#allocation2 + $0x8] sm:$0xf]  ;;  %v3794_v47 = vld [vmem:[#allocation2 + $0xc] sm:$0xf] }
  0x44   : > { %3198 = vmatpush3.bf16.xpose.msra.mxu0 %v611_v25  ;;  %3204 = vmatpush3.bf16.xpose.msra.mxu1 %v662_v26  ;;  %v713_v49 = vsel %vm606_vm4, %v3792_v45, 0  ;;  %v764_v53 = vsel %vm606_vm4, %v3794_v47, 0  ;;  %v3815_v55 = vld [vmem:[#allocation2 + $0x10] sm:$0xf]  ;;  %v3818_v58 = vld [vmem:[#allocation2 + $0x14] sm:$0xf] }
  0x45   : > { %v513_v27 = vstv %s512_s24  ;;  %3209 = vmatprep.subr.bf16.mxu0 %v3605_v23  ;;  %3215 = vmatprep.subr.bf16.mxu1 %v3605_v23  ;;  %v523_v32 = vunpack.c.0.s8 %v522_v30  ;;  %v3790_v42 = vsub.s32 0, %v525_v33  ;;  %v815_v60 = vsel %vm606_vm4, %v3815_v55, 0  ;;  %v3833_v1 = vld [vmem:[#allocation2 + $0x18] sm:$0xf]  ;;  %v3836_v4 = vld [vmem:[#allocation2 + $0x1c] sm:$0xf] }
  0x46   : > { %3464 = vrcp.f32 %v513_v27  ;;  %v866_v63 = vsel %vm606_vm4, %v3818_v58, 0  ;;  %v917_v6 = vsel %vm606_vm4, %v3833_v1, 0  ;;  %v968_v9 = vsel %vm606_vm4, %v3836_v4, 0  ;;  %v3851_v11 = vld [vmem:[#allocation3] sm:$0x3] }
  0x47   : > { %v516_v34 = vld [vmem:[#allocation7] sm:$0xff]  ;;  %v526_v37 = vsub.s32 %v523_v32, %v525_v33  ;;  %v1132_v15 = vsel %vm606_vm4, %v3851_v11, 0  ;;  %v3887_v25 = vld [vmem:[#allocation3 + $0x8] sm:$0x3]  ;;  %v566_v26 = vld [vmem:[#allocation3 + $0xa] sm:$0x3] }
  0x48   : > { %v3854_v13 = vld [vmem:[#allocation3 + $0x2] sm:$0x3]  ;;  %v3869_v18 = vld [vmem:[#allocation3 + $0x4] sm:$0x3]  ;;  %v3872_v19 = vld [vmem:[#allocation3 + $0x6] sm:$0x3] }
  0x49   : > { %v1175_v17 = vsel %vm606_vm4, %v3854_v13, 0  ;;  %v1218_v20 = vsel %vm606_vm4, %v3869_v18, 0  ;;  %v1261_v21 = vsel %vm606_vm4, %v3872_v19, 0  ;;  %v1304_v27 = vsel %vm606_vm4, %v3887_v25, 0  ;;  %v567_v29 = vld [vmem:[#allocation3 + $0xc] sm:$0x3] }
  0x4a   : > { %v568_v30 = vld [vmem:[#allocation3 + $0xe] sm:$0x3]  ;;  %v1390_v32 = vsel %vm606_vm4, %v567_v29, 0  ;;  %vm1732_vm6 = vcmask 1043456   ;;  %vm1010_vm7 = vcmask 57344   ;;  %vm1475_vm8 = vcmask 24576  }
  0x4b   : > { %v1433_v33 = vsel %vm606_vm4, %v568_v30, 0  ;;  %v3983_v29 = vld [vmem:[%s4531_s3 + $0x7] sm:$0x1]  ;;  %vm1728_vm9 = vcmask 64512   ;;  %vm2102_vm10 = vcmask 1041408   ;;  %vm2098_vm11 = vcmask 31744  }
  0x4c   : > { %vm2494_vm12 = vcmask 1041409   ;;  %vm2497_vm13 = vcmask 1042434   ;;  %vm2500_vm14 = vcmask 1043459   ;;  %vm2503_vm15 = vcmask 1044484   ;;  %p3094_p10 = scmp.ne.s32.totalorder %s4495_s29, 1 }
  0x4d   : > { %vm2506_vm0 = vcmask 1045509   ;;  %vm2509_vm1 = vcmask 1046534   ;;  %vm2512_vm2 = vcmask 1047559   ;;  %vm1669_vm3 = vcmask 1040384  }
  0x53   : > { %v3465_v28 = vpop.eup %3464 }
  0x54   : > { %3433 = vpush %v3465_v28  ;;  %v1347_v28 = vsel %vm606_vm4, %v566_v26, 0 }
  0x85   : > { %s3434_s25 = spop %3433 }
  0x86   : > { %v517_v35 = vstv %s3434_s25 }
  0x87   : > { %v518_v36 = vmul.f32 %v517_v35, %v516_v34  ;;  %v1733_v34 = vsel %vm1732_vm6, %v3770_v22, 0  ;;  %v1778_v35 = vsel %vm1732_vm6, %v3774_v24, 0  ;;  %v3926_v22 = vld [vmem:[%s4531_s3] sm:$0x1]  ;;  %v3931_v24 = vld [vmem:[%s4531_s3 + $0x1] sm:$0x1] }
  0x89   : > { %v3787_v38 = vpack.c.bf16 %v518_v36, %v518_v36  ;;  %v3032_v36 = vadd.f32 -1.0, %v3926_v22 }
  0x8b   : > { %v527_v39 = vrot.slane %v3787_v38, %v526_v37 }
  0x8d   : > { %v528_v40 = vcombine.high %v527_v39, %v527_v39  ;;  %v535_v41 = vrot.slane %v527_v39, %v526_v37  ;;  %v593_v39 = vmul.f32 1e+09, %v3032_v36 }
  0x8f   : > { %v546_v43 = vunpack.i.h.s16 %v535_v41  ;;  %v3040_v44 = vpack.i.b16 %v535_v41, %v535_v41  ;;  %v542_v46 = vrot.slane %v528_v40, %v526_v37  ;;  %v543_v56 = vcombine.high %v535_v41, %v535_v41  ;;  %v3938_v40 = vld [vmem:[%s4531_s3 + $0x2] sm:$0x1] }
  0x90   : > { %v3033_v37 = vadd.f32 -1.0, %v3931_v24 }
  0x91   : > { %v3797_v48 = vrot.slane %v3040_v44, %v3790_v42  ;;  %v653_v50 = vpack.i.b16 %v546_v43, %v546_v43  ;;  %v548_v51 = vunpack.i.h.s16 %v542_v46  ;;  %v3043_v54 = vpack.i.b16 %v542_v46, %v542_v46  ;;  %v3943_v43 = vld [vmem:[%s4531_s3 + $0x3] sm:$0x1] }
  0x92   : > { %v550_v61 = vunpack.i.h.s16 %v543_v56  ;;  %v3046_v0 = vpack.i.b16 %v543_v56, %v543_v56  ;;  %v544_v2 = vcombine.high %v542_v46, %v542_v46  ;;  %v594_v41 = vmul.f32 1e+09, %v3033_v37 }
  0x93   : > { %3200 = vmatmul.mubr.msk.bf16.vlgmr.msra.gmra.mxu0 %vm606_vm4, %v3797_v48  ;;  %v3804_v52 = vrot.slane %v653_v50, %v3790_v42  ;;  %v755_v57 = vpack.i.b16 %v548_v51, %v548_v51  ;;  %v708_v59 = vrot.slane %v3043_v54, %v3790_v42  ;;  %v3034_v46 = vadd.f32 -1.0, %v3938_v40 }
  0x94   : > { %3210 = vmatpush3.bf16.xpose.msra.mxu0 %v713_v49  ;;  %3211 = vmatprep.mubr.msk.bf16.mxu0 %vm3606_vm5, %v3605_v23  ;;  %v857_v3 = vpack.i.b16 %v550_v61, %v550_v61  ;;  %v810_v5 = vrot.slane %v3046_v0, %v3790_v42  ;;  %v552_v7 = vunpack.i.h.s16 %v544_v2  ;;  %v3049_v10 = vpack.i.b16 %v544_v2, %v544_v2  ;;  %v3963_v2 = vld [vmem:[%s4531_s3 + $0x5] sm:$0x1] }
  0x95   : > { %3206 = vmatmul.mubr.msk.bf16.vlgmr.msra.gmra.mxu1 %vm606_vm4, %v3804_v52  ;;  %3221 = vmatprep.subr.bf16.mxu0 %v3605_v23  ;;  %v759_v62 = vrot.slane %v755_v57, %v3790_v42  ;;  %v595_v56 = vmul.f32 1e+09, %v3034_v46  ;;  %v3039_v37 = vadd.f32 -1.0, %v3983_v29 }
  0x96   : > { %3216 = vmatpush3.bf16.xpose.msra.mxu1 %v764_v53  ;;  %3217 = vmatprep.mubr.msk.bf16.mxu1 %vm3606_vm5, %v3605_v23  ;;  %v861_v8 = vrot.slane %v857_v3, %v3790_v42  ;;  %v959_v12 = vpack.i.b16 %v552_v7, %v552_v7  ;;  %v912_v14 = vrot.slane %v3049_v10, %v3790_v42  ;;  %v3037_v10 = vadd.f32 -1.0, %v3963_v2 }
  0x97   : > { %3227 = vmatprep.subr.bf16.mxu1 %v3605_v23 }
  0x98   : > { %v963_v16 = vrot.slane %v959_v12, %v3790_v42  ;;  %v598_v26 = vmul.f32 1e+09, %v3037_v10 }
  0x9b   : > { %3212 = vmatmul.mubr.msk.bf16.vlgmr.msra.gmra.mxu0 %vm606_vm4, %v708_v59 }
  0x9c   : > { %3222 = vmatpush3.bf16.xpose.msra.mxu0 %v815_v60  ;;  %3223 = vmatprep.mubr.msk.bf16.mxu0 %vm3606_vm5, %v3605_v23  ;;  %v3956_v60 = vld [vmem:[%s4531_s3 + $0x4] sm:$0x1] }
  0x9d   : > { %3218 = vmatmul.mubr.msk.bf16.vlgmr.msra.gmra.mxu1 %vm606_vm4, %v759_v62  ;;  %3233 = vmatprep.subr.bf16.mxu0 %v3605_v23 }
  0x9e   : > { %3228 = vmatpush3.bf16.xpose.msra.mxu1 %v866_v63  ;;  %3229 = vmatprep.mubr.msk.bf16.mxu1 %vm3606_vm5, %v3605_v23 }
  0x9f   : > { %3239 = vmatprep.subr.bf16.mxu1 %v3605_v23 }
  0xa3   : > { %3224 = vmatmul.mubr.msk.bf16.vlgmr.msra.gmra.mxu0 %vm606_vm4, %v810_v5 }
  0xa4   : > { %3234 = vmatpush3.bf16.xpose.msra.mxu0 %v917_v6  ;;  %3235 = vmatprep.mubr.msk.bf16.mxu0 %vm3606_vm5, %v3605_v23 }
  0xa5   : > { %3230 = vmatmul.mubr.msk.bf16.vlgmr.msra.gmra.mxu1 %vm606_vm4, %v861_v8  ;;  %3245 = vmatprep.subr.bf16.mxu0 %v3605_v23 }
  0xa6   : > { %3240 = vmatpush3.bf16.xpose.msra.mxu1 %v968_v9  ;;  %3241 = vmatprep.mubr.msk.bf16.mxu1 %vm3606_vm5, %v3605_v23 }
  0xa7   : > { %3251 = vmatprep.subr.bf16.mxu1 %v3605_v23 }
  0xab   : > { %3236 = vmatmul.mubr.msk.bf16.vlgmr.msra.gmra.mxu0 %vm606_vm4, %v912_v14 }
  0xac   : > { %3246 = vmatpush3.bf16.xpose.msra.mxu0 %v1132_v15  ;;  %3247 = vmatprep.mubr.msk.bf16.mxu0 %vm3606_vm5, %v3605_v23 }
  0xad   : > { %3242 = vmatmul.mubr.msk.bf16.vlgmr.msra.gmra.mxu1 %vm606_vm4, %v963_v16  ;;  %3257 = vmatprep.subr.bf16.mxu0 %v3605_v23 }
  0xae   : > { %3252 = vmatpush3.bf16.xpose.msra.mxu1 %v1175_v17  ;;  %3253 = vmatprep.mubr.msk.bf16.mxu1 %vm3606_vm5, %v3605_v23 }
  0xaf   : > { %3263 = vmatprep.subr.bf16.mxu1 %v3605_v23 }
  0xb3   : > { %3248 = vmatmul.mubr.msk.bf16.vlgmr.msra.gmra.mxu0 %vm606_vm4, %v3797_v48 }
  0xb4   : > { %3258 = vmatpush3.bf16.xpose.msra.mxu0 %v1218_v20  ;;  %3259 = vmatprep.mubr.msk.bf16.mxu0 %vm3606_vm5, %v3605_v23  ;;  %v3976_v20 = vld [vmem:[%s4531_s3 + $0x6] sm:$0x1] }
  0xb5   : > { %3254 = vmatmul.mubr.msk.bf16.vlgmr.msra.gmra.mxu1 %vm606_vm4, %v3804_v52  ;;  %3269 = vmatprep.subr.bf16.mxu0 %v3605_v23  ;;  %v3035_v52 = vadd.f32 -1.0, %v3943_v43 }
  0xb6   : > { %3264 = vmatpush3.bf16.xpose.msra.mxu1 %v1261_v21  ;;  %3265 = vmatprep.mubr.msk.bf16.mxu1 %vm3606_vm5, %v3605_v23 }
  0xb7   : > { %3275 = vmatprep.subr.bf16.mxu1 %v3605_v23 }
  0xbb   : > { %3260 = vmatmul.mubr.msk.bf16.vlgmr.msra.gmra.mxu0 %vm606_vm4, %v708_v59 }
  0xbc   : > { %3270 = vmatpush3.bf16.xpose.msra.mxu0 %v1304_v27  ;;  %3271 = vmatprep.mubr.msk.bf16.mxu0 %vm3606_vm5, %v3605_v23 }
  0xbd   : > { %3266 = vmatmul.mubr.msk.bf16.vlgmr.msra.gmra.mxu1 %vm606_vm4, %v759_v62  ;;  %3281 = vmatprep.subr.bf16.mxu0 %v3605_v23  ;;  %v596_v62 = vmul.f32 1e+09, %v3035_v52  ;;  %v600_v52 = vmul.f32 1e+09, %v3039_v37 }
  0xbe   : > { %3276 = vmatpush3.bf16.xpose.msra.mxu1 %v1347_v28  ;;  %3277 = vmatprep.mubr.msk.bf16.mxu1 %vm3606_vm5, %v3605_v23 }
  0xbf   : > { %3287 = vmatprep.subr.bf16.mxu1 %v3605_v23 }
  0xc3   : > { %3272 = vmatmul.mubr.msk.bf16.vlgmr.msra.gmra.mxu0 %vm606_vm4, %v810_v5  ;;  %v3036_v5 = vadd.f32 -1.0, %v3956_v60 }
  0xc4   : > { %3282 = vmatpush3.bf16.xpose.msra.mxu0 %v1390_v32  ;;  %3283 = vmatprep.mubr.msk.bf16.mxu0 %vm3606_vm5, %v3605_v23  ;;  %v3038_v32 = vadd.f32 -1.0, %v3976_v20 }
  0xc5   : > { %3278 = vmatmul.mubr.msk.bf16.vlgmr.msra.gmra.mxu1 %vm606_vm4, %v861_v8  ;;  %3293 = vmatprep.subr.bf16.mxu0 %v3605_v23  ;;  %v597_v15 = vmul.f32 1e+09, %v3036_v5 }
  0xc6   : > { %3288 = vmatpush3.bf16.xpose.msra.mxu1 %v1433_v33  ;;  %3289 = vmatprep.mubr.msk.bf16.mxu1 %vm3606_vm5, %v3605_v23  ;;  %v599_v46 = vmul.f32 1e+09, %v3038_v32 }
  0xc7   : > { %3299 = vmatprep.subr.bf16.mxu1 %v3605_v23 }
  0xcb   : > { %3284 = vmatmul.mubr.msk.bf16.vlgmr.msra.gmra.mxu0 %vm606_vm4, %v912_v14 }
  0xcc   : > { %3294 = vmatpush3.bf16.msra.mxu0 %v1733_v34  ;;  %3295 = vmatprep.mubr.msk.bf16.mxu0 %vm3606_vm5, %v3605_v23 }
  0xcd   : > { %3290 = vmatmul.mubr.msk.bf16.vlgmr.msra.gmra.mxu1 %vm606_vm4, %v963_v16  ;;  %3305 = vmatprep.subr.bf16.mxu0 %v3605_v23 }
  0xce   : > { %3300 = vmatpush3.bf16.msra.mxu1 %v1778_v35  ;;  %3301 = vmatprep.mubr.msk.bf16.mxu1 %vm3606_vm5, %v3605_v23 }
  0xcf   : > { %3311 = vmatprep.subr.bf16.mxu1 %v3605_v23 }
 0x153   : > { %v647_v42 = vpop.f32.mrf.mxu0 }
 0x154   : > { %v3945_v44 = vadd.f32 %v647_v42, %v593_v39 }
 0x155   : > { %v3201_v48 = vpop.f32.mrf.mxu0  ;;  %v698_v49 = vpop.f32.mrf.mxu1 }
 0x156   : > { %v3948_v50 = vadd.f32 %v698_v49, %v594_v41  ;;  %v1011_v51 = vsel %vm1010_vm7, %v3945_v44, -inf }
 0x157   : > { %1012 = vmax.xlane.f32.xlu0 %v1011_v51  ;;  %v650_v53 = vpop.f32.mrf.mxu0  ;;  %v3207_v54 = vpop.f32.mrf.mxu1  ;;  %v3998_v51 = vld [vmem:[%s4532_s4] sm:$0x1] }
 0x158   : > { %v1014_v61 = vsel %vm1010_vm7, %v3948_v50, -inf }
 0x159   : > { %v3202_v57 = vpop.f32.mrf.mxu0  ;;  %v701_v59 = vpop.f32.mrf.mxu1 }
 0x15a   : > { %v3052_v59 = vadd.f32 -1.0, %v3998_v51 }
 0x15b   : > { %1015 = vmax.xlane.f32.xlu0 %v1014_v61  ;;  %v3208_v63 = vpop.f32.mrf.mxu1  ;;  %v749_v0 = vpop.f32.mrf.mxu0 }
 0x15c   : > { %v3965_v3 = vadd.f32 %v749_v0, %v595_v56  ;;  %v4003_v56 = vld [vmem:[%s4532_s4 + $0x1] sm:$0x1]  ;;  %v1123_v10 = vmul.f32 1e+09, %v3052_v59 }
 0x15d   : > { %v3213_v6 = vpop.f32.mrf.mxu0  ;;  %v800_v7 = vpop.f32.mrf.mxu1  ;;  %v3053_v5 = vadd.f32 -1.0, %v4003_v56 }
 0x15e   : > { %v3968_v8 = vadd.f32 %v800_v7, %v596_v62  ;;  %v1017_v9 = vsel %vm1010_vm7, %v3965_v3, -inf }
 0x15f   : > { %1018 = vmax.xlane.f32.xlu1 %v1017_v9  ;;  %v752_v12 = vpop.f32.mrf.mxu0  ;;  %v3219_v14 = vpop.f32.mrf.mxu1 }
 0x160   : > { %v1020_v21 = vsel %vm1010_vm7, %v3968_v8, -inf }
 0x161   : > { %v3214_v16 = vpop.f32.mrf.mxu0  ;;  %v803_v17 = vpop.f32.mrf.mxu1 }
 0x162   : > { %v1124_v16 = vmul.f32 1e+09, %v3053_v5 }
 0x163   : > { %v851_v27 = vpop.f32.mrf.mxu0  ;;  %1021 = vmax.xlane.f32.xlu1 %v1020_v21  ;;  %v3220_v28 = vpop.f32.mrf.mxu1 }
 0x164   : > { %v3985_v30 = vadd.f32 %v851_v27, %v597_v15  ;;  %v4018_v15 = vld [vmem:[%s4532_s4 + $0x2] sm:$0x1] }
 0x165   : > { %v3225_v33 = vpop.f32.mrf.mxu0  ;;  %v902_v34 = vpop.f32.mrf.mxu1  ;;  %v3054_v28 = vadd.f32 -1.0, %v4018_v15 }
 0x166   : > { %v3988_v35 = vadd.f32 %v902_v34, %v598_v26  ;;  %v1023_v36 = vsel %vm1010_vm7, %v3985_v30, -inf  ;;  %v4023_v26 = vld [vmem:[%s4532_s4 + $0x3] sm:$0x1] }
 0x167   : > { %1024 = vmax.xlane.f32.xlu0 %v1023_v36  ;;  %v854_v39 = vpop.f32.mrf.mxu0  ;;  %v3231_v41 = vpop.f32.mrf.mxu1  ;;  %v3055_v37 = vadd.f32 -1.0, %v4023_v26 }
 0x168   : > { %v1026_v42 = vsel %vm1010_vm7, %v3988_v35, -inf }
 0x169   : > { %v3226_v48 = vpop.f32.mrf.mxu0  ;;  %1027 = vmax.xlane.f32.xlu1 %v1026_v42  ;;  %v905_v49 = vpop.f32.mrf.mxu1 }
 0x16b   : > { %v3232_v53 = vpop.f32.mrf.mxu1  ;;  %v953_v54 = vpop.f32.mrf.mxu0 }
 0x16c   : > { %v4005_v57 = vadd.f32 %v953_v54, %v599_v46  ;;  %v1125_v46 = vmul.f32 1e+09, %v3054_v28  ;;  %v1126_v53 = vmul.f32 1e+09, %v3055_v37 }
 0x16d   : > { %v3237_v61 = vpop.f32.mrf.mxu0  ;;  %v1004_v62 = vpop.f32.mrf.mxu1 }
 0x16e   : > { %v4008_v63 = vadd.f32 %v1004_v62, %v600_v52  ;;  %v1029_v0 = vsel %vm1010_vm7, %v4005_v57, -inf  ;;  %v4038_v52 = vld [vmem:[%s4532_s4 + $0x4] sm:$0x1]  ;;  %v4043_v61 = vld [vmem:[%s4532_s4 + $0x5] sm:$0x1] }
 0x16f   : > { %1030 = vmax.xlane.f32.xlu0 %v1029_v0  ;;  %v956_v6 = vpop.f32.mrf.mxu0  ;;  %v3243_v7 = vpop.f32.mrf.mxu1  ;;  %v3056_v0 = vadd.f32 -1.0, %v4038_v52 }
 0x170   : > { %v1032_v9 = vsel %vm1010_vm7, %v4008_v63, -inf }
 0x171   : > { %v3238_v12 = vpop.f32.mrf.mxu0  ;;  %1033 = vmax.xlane.f32.xlu1 %v1032_v9  ;;  %v1007_v14 = vpop.f32.mrf.mxu1 }
 0x173   : > { %v3244_v17 = vpop.f32.mrf.mxu1  ;;  %v1168_v21 = vpop.f32.mrf.mxu0 }
 0x174   : > { %v4025_v27 = vadd.f32 %v1168_v21, %v1123_v10  ;;  %v3057_v10 = vadd.f32 -1.0, %v4043_v61  ;;  %v1127_v17 = vmul.f32 1e+09, %v3056_v0 }
 0x175   : > { %v3249_v32 = vpop.f32.mrf.mxu0  ;;  %v1211_v33 = vpop.f32.mrf.mxu1 }
 0x176   : > { %v4028_v34 = vadd.f32 %v1211_v33, %v1124_v16  ;;  %v1476_v36 = vsel %vm1475_vm8, %v4025_v27, -inf  ;;  %v4058_v32 = vld [vmem:[%s4532_s4 + $0x6] sm:$0x1]  ;;  %v1128_v33 = vmul.f32 1e+09, %v3057_v10 }
 0x177   : > { %1477 = vmax.xlane.f32.xlu0 %v1476_v36  ;;  %v1171_v39 = vpop.f32.mrf.mxu0  ;;  %v3255_v41 = vpop.f32.mrf.mxu1 }
 0x178   : > { %v1479_v42 = vsel %vm1475_vm8, %v4028_v34, -inf  ;;  %v4063_v39 = vld [vmem:[%s4532_s4 + $0x7] sm:$0x1] }
 0x179   : > { %v3250_v48 = vpop.f32.mrf.mxu0  ;;  %1480 = vmax.xlane.f32.xlu1 %v1479_v42  ;;  %v1214_v49 = vpop.f32.mrf.mxu1  ;;  %v3058_v42 = vadd.f32 -1.0, %v4058_v32 }
 0x17b   : > { %v3256_v54 = vpop.f32.mrf.mxu1  ;;  %v1254_v59 = vpop.f32.mrf.mxu0 }
 0x17c   : > { %v4045_v62 = vadd.f32 %v1254_v59, %v1125_v46  ;;  %v3059_v54 = vadd.f32 -1.0, %v4063_v39 }
 0x17d   : > { %v3261_v5 = vpop.f32.mrf.mxu0  ;;  %v1297_v6 = vpop.f32.mrf.mxu1 }
 0x17e   : > { %v4048_v7 = vadd.f32 %v1297_v6, %v1126_v53  ;;  %v1482_v9 = vsel %vm1475_vm8, %v4045_v62, -inf  ;;  %v1129_v6 = vmul.f32 1e+09, %v3058_v42 }
 0x17f   : > { %1483 = vmax.xlane.f32.xlu0 %v1482_v9  ;;  %v1257_v12 = vpop.f32.mrf.mxu0  ;;  %v3267_v14 = vpop.f32.mrf.mxu1 }
 0x180   : > { %v1485_v16 = vsel %vm1475_vm8, %v4048_v7, -inf  ;;  %v1130_v12 = vmul.f32 1e+09, %v3059_v54 }
 0x181   : > { %v3262_v21 = vpop.f32.mrf.mxu0  ;;  %1486 = vmax.xlane.f32.xlu1 %v1485_v16  ;;  %v1300_v28 = vpop.f32.mrf.mxu1 }
 0x183   : > { %v3268_v36 = vpop.f32.mrf.mxu1  ;;  %v1340_v37 = vpop.f32.mrf.mxu0 }
 0x184   : > { %v4065_v41 = vadd.f32 %v1340_v37, %v1127_v17 }
 0x185   : > { %v3273_v46 = vpop.f32.mrf.mxu0  ;;  %v1383_v48 = vpop.f32.mrf.mxu1 }
 0x186   : > { %v4068_v49 = vadd.f32 %v1383_v48, %v1128_v33  ;;  %v1488_v53 = vsel %vm1475_vm8, %v4065_v41, -inf }
 0x187   : > { %1489 = vmax.xlane.f32.xlu0 %v1488_v53  ;;  %v1343_v59 = vpop.f32.mrf.mxu0  ;;  %v3279_v0 = vpop.f32.mrf.mxu1 }
 0x188   : > { %v1491_v5 = vsel %vm1475_vm8, %v4068_v49, -inf }
 0x189   : > { %v3274_v9 = vpop.f32.mrf.mxu0  ;;  %1492 = vmax.xlane.f32.xlu1 %v1491_v5  ;;  %v1386_v10 = vpop.f32.mrf.mxu1 }
 0x18b   : > { %v3280_v14 = vpop.f32.mrf.mxu1  ;;  %v1426_v16 = vpop.f32.mrf.mxu0 }
 0x18c   : > { %v4075_v17 = vadd.f32 %v1426_v16, %v1129_v6 }
 0x18d   : > { %v3285_v21 = vpop.f32.mrf.mxu0  ;;  %v1469_v28 = vpop.f32.mrf.mxu1 }
 0x18e   : > { %v4077_v33 = vadd.f32 %v1469_v28, %v1130_v12  ;;  %v1494_v36 = vsel %vm1475_vm8, %v4075_v17, -inf }
 0x18f   : > { %1495 = vmax.xlane.f32.xlu0 %v1494_v36  ;;  %v1429_v37 = vpop.f32.mrf.mxu0  ;;  %v3291_v46 = vpop.f32.mrf.mxu1 }
 0x190   : > { %v1497_v42 = vsel %vm1475_vm8, %v4077_v33, -inf }
 0x191   : > { %v3286_v48 = vpop.f32.mrf.mxu0  ;;  %1498 = vmax.xlane.f32.xlu1 %v1497_v42  ;;  %v1472_v53 = vpop.f32.mrf.mxu1 }
 0x193   : > { %v3292_v54 = vpop.f32.mrf.mxu1 }
 0x1e0   : > { %v1013_v59 = vpop.xlane.xlu0 %1012 }
 0x1e1   : > { %v1035_v0 = vsub.f32 %v3945_v44, %v1013_v59 }
 0x1e3   : > { %v1043_v5 = vmul.f32 1.442695, %v1035_v0 }
 0x1e4   : > { %v1016_v6 = vpop.xlane.xlu0 %1015 }
 0x1e5   : > { %3466 = vpow2.f32 %v1043_v5  ;;  %v1036_v9 = vsub.f32 %v3948_v50, %v1016_v6 }
 0x1e7   : > { %v1045_v10 = vmul.f32 1.442695, %v1036_v9 }
 0x1e8   : > { %v1019_v12 = vpop.xlane.xlu1 %1018 }
 0x1e9   : > { %3468 = vpow2.f32 %v1045_v10  ;;  %v1037_v14 = vsub.f32 %v3965_v3, %v1019_v12 }
 0x1eb   : > { %v1047_v16 = vmul.f32 1.442695, %v1037_v14 }
 0x1ec   : > { %v1022_v21 = vpop.xlane.xlu1 %1021 }
 0x1ed   : > { %3470 = vpow2.f32 %v1047_v16  ;;  %v1038_v28 = vsub.f32 %v3968_v8, %v1022_v21 }
 0x1ef   : > { %v1049_v36 = vmul.f32 1.442695, %v1038_v28 }
 0x1f0   : > { %v1025_v37 = vpop.xlane.xlu0 %1024 }
 0x1f1   : > { %3472 = vpow2.f32 %v1049_v36  ;;  %v1039_v44 = vsub.f32 %v3985_v30, %v1025_v37 }
 0x1f2   : > { %v3467_v46 = vpop.eup %3466  ;;  %v1028_v42 = vpop.xlane.xlu1 %1027 }
 0x1f3   : > { %v1051_v48 = vmul.f32 1.442695, %v1039_v44  ;;  %v1040_v50 = vsub.f32 %v3988_v35, %v1028_v42  ;;  %v4090_v53 = vmul.f32 %v3467_v46, %v3926_v22 }
 0x1f5   : > { %3474 = vpow2.f32 %v1051_v48  ;;  %v1053_v3 = vmul.f32 1.442695, %v1040_v50  ;;  %v1067_v54 = vsel %vm1010_vm7, %v4090_v53, 0.0 }
 0x1f6   : > { %v3469_v59 = vpop.eup %3468  ;;  %1068 = vadd.xlane.f32.xlu0 %v1067_v54 }
 0x1f7   : > { %3476 = vpow2.f32 %v1053_v3  ;;  %v4095_v8 = vmul.f32 %v3469_v59, %v3931_v24 }
 0x1f8   : > { %v1031_v30 = vpop.xlane.xlu0 %1030 }
 0x1f9   : > { %v1041_v0 = vsub.f32 %v4005_v57, %v1031_v30  ;;  %v1070_v35 = vsel %vm1010_vm7, %v4095_v8, 0.0 }
 0x1fa   : > { %v3471_v5 = vpop.eup %3470  ;;  %v1034_v22 = vpop.xlane.xlu1 %1033  ;;  %1071 = vadd.xlane.f32.xlu1 %v1070_v35 }
 0x1fb   : > { %v1055_v6 = vmul.f32 1.442695, %v1041_v0  ;;  %v1042_v9 = vsub.f32 %v4008_v63, %v1034_v22  ;;  %v4102_v10 = vmul.f32 %v3471_v5, %v3938_v40 }
 0x1fd   : > { %3478 = vpow2.f32 %v1055_v6  ;;  %v1057_v12 = vmul.f32 1.442695, %v1042_v9  ;;  %v1073_v24 = vsel %vm1010_vm7, %v4102_v10, 0.0 }
 0x1fe   : > { %v3473_v14 = vpop.eup %3472  ;;  %1074 = vadd.xlane.f32.xlu0 %v1073_v24 }
 0x1ff   : > { %3480 = vpow2.f32 %v1057_v12  ;;  %v4107_v57 = vmul.f32 %v3473_v14, %v3943_v43 }
 0x200   : > { %v1478_v16 = vpop.xlane.xlu0 %1477 }
 0x201   : > { %v1500_v21 = vsub.f32 %v4025_v27, %v1478_v16  ;;  %v1076_v63 = vsel %vm1010_vm7, %v4107_v57, 0.0 }
 0x202   : > { %v3475_v28 = vpop.eup %3474  ;;  %v1481_v40 = vpop.xlane.xlu1 %1480  ;;  %1077 = vadd.xlane.f32.xlu1 %v1076_v63 }
 0x203   : > { %v1508_v36 = vmul.f32 1.442695, %v1500_v21  ;;  %v1501_v37 = vsub.f32 %v4028_v34, %v1481_v40  ;;  %v4114_v44 = vmul.f32 %v3475_v28, %v3956_v60 }
 0x204   : > { %v3477_v46 = vpop.eup %3476 }
 0x205   : > { %3482 = vpow2.f32 %v1508_v36  ;;  %v1510_v42 = vmul.f32 1.442695, %v1501_v37  ;;  %v1079_v43 = vsel %vm1010_vm7, %v4114_v44, 0.0  ;;  %v4119_v27 = vmul.f32 %v3477_v46, %v3963_v2 }
 0x206   : > { %1080 = vadd.xlane.f32.xlu0 %v1079_v43 }
 0x207   : > { %3484 = vpow2.f32 %v1510_v42  ;;  %v1082_v48 = vsel %vm1010_vm7, %v4119_v27, 0.0 }
 0x208   : > { %v1484_v50 = vpop.xlane.xlu0 %1483  ;;  %1083 = vadd.xlane.f32.xlu1 %v1082_v48 }
 0x209   : > { %v1502_v34 = vsub.f32 %v4045_v62, %v1484_v50 }
 0x20a   : > { %v3479_v60 = vpop.eup %3478  ;;  %v1487_v3 = vpop.xlane.xlu1 %1486 }
 0x20b   : > { %v1512_v54 = vmul.f32 1.442695, %v1502_v34  ;;  %v1503_v59 = vsub.f32 %v4048_v7, %v1487_v3  ;;  %v4126_v30 = vmul.f32 %v3479_v60, %v3976_v20 }
 0x20c   : > { %v3481_v0 = vpop.eup %3480 }
 0x20d   : > { %3486 = vpow2.f32 %v1512_v54  ;;  %v1514_v2 = vmul.f32 1.442695, %v1503_v59  ;;  %v1085_v35 = vsel %vm1010_vm7, %v4126_v30, 0.0  ;;  %v4131_v5 = vmul.f32 %v3481_v0, %v3983_v29 }
 0x20e   : > { %1086 = vadd.xlane.f32.xlu0 %v1085_v35 }
 0x20f   : > { %3488 = vpow2.f32 %v1514_v2  ;;  %v1088_v62 = vsel %vm1010_vm7, %v4131_v5, 0.0 }
 0x210   : > { %v1490_v22 = vpop.xlane.xlu0 %1489  ;;  %1089 = vadd.xlane.f32.xlu1 %v1088_v62 }
 0x211   : > { %v1504_v7 = vsub.f32 %v4065_v41, %v1490_v22 }
 0x212   : > { %v3483_v20 = vpop.eup %3482  ;;  %v1493_v6 = vpop.xlane.xlu1 %1492 }
 0x213   : > { %v1516_v9 = vmul.f32 1.442695, %v1504_v7  ;;  %v1505_v12 = vsub.f32 %v4068_v49, %v1493_v6  ;;  %v4138_v24 = vmul.f32 %v3483_v20, %v3998_v51 }
 0x214   : > { %v3485_v14 = vpop.eup %3484 }
 0x215   : > { %3490 = vpow2.f32 %v1516_v9  ;;  %v1518_v29 = vmul.f32 1.442695, %v1505_v12  ;;  %v1532_v16 = vsel %vm1475_vm8, %v4138_v24, 0.0  ;;  %v4143_v21 = vmul.f32 %v3485_v14, %v4003_v56  ;;  %v1580_v9 = vld [vmem:[#allocation8] sm:$0x1] }
 0x216   : > { %1533 = vadd.xlane.f32.xlu0 %v1532_v16  ;;  %v1823_v16 = vsel %vm1732_vm6, %v3792_v45, 0 }
 0x217   : > { %3492 = vpow2.f32 %v1518_v29  ;;  %v1535_v41 = vsel %vm1475_vm8, %v4143_v21, 0.0 }
 0x218   : > { %v1496_v63 = vpop.xlane.xlu0 %1495  ;;  %1536 = vadd.xlane.f32.xlu1 %v1535_v41 }
 0x219   : > { %v1506_v49 = vsub.f32 %v4075_v17, %v1496_v63 }
 0x21a   : > { %v3487_v51 = vpop.eup %3486  ;;  %v1499_v28 = vpop.xlane.xlu1 %1498 }
 0x21b   : > { %v1520_v40 = vmul.f32 1.442695, %v1506_v49  ;;  %v1507_v36 = vsub.f32 %v4077_v33, %v1499_v28  ;;  %v4150_v37 = vmul.f32 %v3487_v51, %v4018_v15 }
 0x21c   : > { %v3489_v46 = vpop.eup %3488 }
 0x21d   : > { %3494 = vpow2.f32 %v1520_v40  ;;  %v1522_v56 = vmul.f32 1.442695, %v1507_v36  ;;  %v1538_v42 = vsel %vm1475_vm8, %v4150_v37, 0.0  ;;  %v4155_v43 = vmul.f32 %v3489_v46, %v4023_v26  ;;  %v4182_v40 = vld [vmem:[#allocation8 + $0x1] sm:$0x1] }
 0x21e   : > { %1539 = vadd.xlane.f32.xlu0 %v1538_v42  ;;  %v1868_v46 = vsel %vm1732_vm6, %v3794_v47, 0  ;;  %v4205_v47 = vld [vmem:[#allocation8 + $0x2] sm:$0x1] }
 0x21f   : > { %3496 = vpow2.f32 %v1522_v56  ;;  %v1541_v17 = vsel %vm1475_vm8, %v4155_v43, 0.0 }
 0x220   : > { %1542 = vadd.xlane.f32.xlu1 %v1541_v17 }
 0x222   : > { %v3491_v48 = vpop.eup %3490 }
 0x223   : > { %v4160_v33 = vmul.f32 %v3491_v48, %v4038_v52 }
 0x224   : > { %v3493_v15 = vpop.eup %3492 }
 0x225   : > { %v1544_v50 = vsel %vm1475_vm8, %v4160_v33, 0.0  ;;  %v4165_v34 = vmul.f32 %v3493_v15, %v4043_v61 }
 0x226   : > { %1545 = vadd.xlane.f32.xlu0 %v1544_v50 }
 0x227   : > { %v1547_v26 = vsel %vm1475_vm8, %v4165_v34, 0.0 }
 0x228   : > { %1548 = vadd.xlane.f32.xlu1 %v1547_v26 }
 0x22a   : > { %v3495_v60 = vpop.eup %3494 }
 0x22b   : > { %v4170_v3 = vmul.f32 %v3495_v60, %v4058_v32 }
 0x22c   : > { %v3497_v54 = vpop.eup %3496 }
 0x22d   : > { %v1550_v52 = vsel %vm1475_vm8, %v4170_v3, 0.0  ;;  %v4175_v59 = vmul.f32 %v3497_v54, %v4063_v39 }
 0x22e   : > { %1551 = vadd.xlane.f32.xlu0 %v1550_v52 }
 0x22f   : > { %v1553_v61 = vsel %vm1475_vm8, %v4175_v59, 0.0 }
 0x230   : > { %1554 = vadd.xlane.f32.xlu1 %v1553_v61  ;;  %v4217_v61 = vld [vmem:[#allocation8 + $0x3] sm:$0x1] }
 0x27f   : > { %v1069_v0 = vpop.xlane.xlu0 %1068 }
 0x280   : > { %v1091_v2 = vadd.f32 1e-09, %v1069_v0 }
 0x282   : > { %3498 = vrcp.f32 %v1091_v2  ;;  %v1958_v2 = vsel %vm1732_vm6, %v3818_v58, 0 }
 0x283   : > { %v1072_v35 = vpop.xlane.xlu1 %1071 }
 0x284   : > { %v1092_v62 = vadd.f32 1e-09, %v1072_v35 }
 0x286   : > { %3500 = vrcp.f32 %v1092_v62 }
 0x287   : > { %v1075_v32 = vpop.xlane.xlu0 %1074 }
 0x288   : > { %v1093_v22 = vadd.f32 1e-09, %v1075_v32 }
 0x28a   : > { %3502 = vrcp.f32 %v1093_v22 }
 0x28b   : > { %v1078_v7 = vpop.xlane.xlu1 %1077 }
 0x28c   : > { %v1094_v20 = vadd.f32 1e-09, %v1078_v7 }
 0x28e   : > { %3504 = vrcp.f32 %v1094_v20  ;;  %v4240_v20 = vld [vmem:[#allocation8 + $0x4] sm:$0x1] }
 0x28f   : > { %v3499_v6 = vpop.eup %3498  ;;  %v1081_v39 = vpop.xlane.xlu0 %1080 }
 0x290   : > { %v1107_v12 = vmul.f32 %v3499_v6, %v4090_v53  ;;  %v1095_v14 = vadd.f32 1e-09, %v1081_v39  ;;  %v2003_v39 = vsel %vm1732_vm6, %v3833_v1, 0 }
 0x291   : > { %v1084_v29 = vpop.xlane.xlu1 %1083 }
 0x292   : > { %3506 = vrcp.f32 %v1095_v14  ;;  %v1096_v41 = vadd.f32 1e-09, %v1084_v29  ;;  %v1720_v63 = vpack.c.bf16 %v1107_v12, %v1107_v12  ;;  %v1596_v49 = vmin.f32 %v1107_v12, %v1580_v9 }
 0x293   : > { %v3501_v51 = vpop.eup %3500  ;;  %v1688_v28 = vadd.f32 %v1580_v9, %v1107_v12  ;;  %v4246_v9 = vld [vmem:[#allocation8 + $0x5] sm:$0x1] }
 0x294   : > { %v4185_v36 = vmul.f32 %v3501_v51, %v4095_v8  ;;  %3508 = vrcp.f32 %v1096_v41  ;;  %3296 = vmatmul.mubr.msk.bf16.vlgmr.msra.gmra.mxu0 %vm1728_vm9, %v1720_v63  ;;  %v1604_v53 = vsel %vm1010_vm7, %v1596_v49, 0.0  ;;  %v2048_v63 = vsel %vm1732_vm6, %v3836_v4, 0 }
 0x295   : > { %1696 = vst.msk [vmem:[#allocation8] sm:$0x1] %vm1010_vm7, %v1688_v28  ;;  %1605 = vadd.xlane.f32.xlu1 %v1604_v53  ;;  %3306 = vmatpush3.bf16.msra.mxu0 %v1823_v16  ;;  %v2103_v4 = vsel %vm2102_vm10, %v3851_v11, 0 }
 0x296   : > { %v1721_v45 = vpack.c.bf16 %v4185_v36, %v4185_v36  ;;  %3307 = vmatprep.mubr.msk.bf16.mxu0 %vm3606_vm5, %v3605_v23  ;;  %3317 = vmatprep.subr.bf16.mxu0 %v3605_v23  ;;  %v1597_v8 = vmin.f32 %v4185_v36, %v4182_v40  ;;  %v1689_v56 = vadd.f32 %v4182_v40, %v4185_v36 }
 0x297   : > { %v3503_v42 = vpop.eup %3502  ;;  %v1087_v17 = vpop.xlane.xlu0 %1086 }
 0x298   : > { %v4202_v48 = vmul.f32 %v3503_v42, %v4102_v10  ;;  %v1097_v15 = vadd.f32 1e-09, %v1087_v17  ;;  %3302 = vmatmul.mubr.msk.bf16.vlgmr.msra.gmra.mxu1 %vm1728_vm9, %v1721_v45  ;;  %1697 = vst.msk [vmem:[#allocation8 + $0x1] sm:$0x1] %vm1010_vm7, %v1689_v56  ;;  %v1913_v10 = vsel %vm1732_vm6, %v3815_v55, 0 }
 0x299   : > { %3312 = vmatpush3.bf16.msra.mxu1 %v1868_v46  ;;  %v1090_v50 = vpop.xlane.xlu1 %1089  ;;  %3313 = vmatprep.mubr.msk.bf16.mxu1 %vm3606_vm5, %v3605_v23  ;;  %v4276_v45 = vld [vmem:[#allocation8 + $0x6] sm:$0x1]  ;;  %v4282_v42 = vld [vmem:[#allocation8 + $0x7] sm:$0x1] }
 0x29a   : > { %3510 = vrcp.f32 %v1097_v15  ;;  %v1098_v26 = vadd.f32 1e-09, %v1090_v50  ;;  %v1722_v60 = vpack.c.bf16 %v4202_v48, %v4202_v48  ;;  %3323 = vmatprep.subr.bf16.mxu1 %v3605_v23  ;;  %v1690_v52 = vadd.f32 %v4205_v47, %v4202_v48 }
 0x29b   : > { %v3505_v54 = vpop.eup %3504 }
 0x29c   : > { %v4220_v0 = vmul.f32 %v3505_v54, %v4107_v57  ;;  %3512 = vrcp.f32 %v1098_v26  ;;  %3308 = vmatmul.mubr.msk.bf16.vlgmr.msra.gmra.mxu0 %vm1728_vm9, %v1722_v60  ;;  %1698 = vst.msk [vmem:[#allocation8 + $0x2] sm:$0x1] %vm1010_vm7, %v1690_v52 }
 0x29d   : > { %3318 = vmatpush3.bf16.msra.mxu0 %v1913_v10  ;;  %3319 = vmatprep.mubr.msk.bf16.mxu0 %vm3606_vm5, %v3605_v23  ;;  %v2148_v10 = vsel %vm2102_vm10, %v3854_v13, 0  ;;  %v4314_v13 = vld [vmem:[#allocation9 + $0x1] sm:$0x1] }
 0x29e   : > { %v1723_v55 = vpack.c.bf16 %v4220_v0, %v4220_v0  ;;  %3329 = vmatprep.subr.bf16.mxu0 %v3605_v23  ;;  %v1599_v57 = vmin.f32 %v4220_v0, %v4217_v61  ;;  %v1691_v35 = vadd.f32 %v4217_v61, %v4220_v0 }
 0x29f   : > { %v3507_v62 = vpop.eup %3506  ;;  %v1534_v32 = vpop.xlane.xlu0 %1533 }
 0x2a0   : > { %v4236_v22 = vmul.f32 %v3507_v62, %v4114_v44  ;;  %v1556_v7 = vadd.f32 1e-09, %v1534_v32  ;;  %3314 = vmatmul.mubr.msk.bf16.vlgmr.msra.gmra.mxu1 %vm1728_vm9, %v1723_v55  ;;  %1699 = vst.msk [vmem:[#allocation8 + $0x3] sm:$0x1] %vm1010_vm7, %v1691_v35  ;;  %v1588_v35 = vld [vmem:[#allocation9] sm:$0x1] }
 0x2a1   : > { %v3509_v58 = vpop.eup %3508  ;;  %3324 = vmatpush3.bf16.msra.mxu1 %v1958_v2  ;;  %v1537_v6 = vpop.xlane.xlu1 %1536  ;;  %3325 = vmatprep.mubr.msk.bf16.mxu1 %vm3606_vm5, %v3605_v23  ;;  %v1613_v40 = vsel %vm1010_vm7, %v1599_v57, 0.0 }
 0x2a2   : > { %v4249_v44 = vmul.f32 %v3509_v58, %v4119_v27  ;;  %3514 = vrcp.f32 %v1556_v7  ;;  %v1557_v12 = vadd.f32 1e-09, %v1537_v6  ;;  %v1724_v14 = vpack.c.bf16 %v4236_v22, %v4236_v22  ;;  %3335 = vmatprep.subr.bf16.mxu1 %v3605_v23 }
 0x2a3   : > { %v1600_v29 = vmin.f32 %v4236_v22, %v4240_v20  ;;  %v1692_v1 = vadd.f32 %v4240_v20, %v4236_v22  ;;  %v2193_v7 = vsel %vm2102_vm10, %v3869_v18, 0 }
 0x2a4   : > { %3516 = vrcp.f32 %v1557_v12  ;;  %3320 = vmatmul.mubr.msk.bf16.vlgmr.msra.gmra.mxu0 %vm1728_vm9, %v1724_v14  ;;  %v1601_v27 = vmin.f32 %v4249_v44, %v4246_v9  ;;  %v1693_v16 = vadd.f32 %v4246_v9, %v4249_v44  ;;  %v1725_v41 = vpack.c.bf16 %v4249_v44, %v4249_v44 }
 0x2a5   : > { %3330 = vmatpush3.bf16.msra.mxu0 %v2003_v39  ;;  %3331 = vmatprep.mubr.msk.bf16.mxu0 %vm3606_vm5, %v3605_v23  ;;  %1700 = vst.msk [vmem:[#allocation8 + $0x4] sm:$0x1] %vm1010_vm7, %v1692_v1  ;;  %v1616_v36 = vsel %vm1010_vm7, %v1600_v29, 0.0 }
 0x2a6   : > { %3341 = vmatprep.subr.bf16.mxu0 %v3605_v23  ;;  %1701 = vst.msk [vmem:[#allocation8 + $0x5] sm:$0x1] %vm1010_vm7, %v1693_v16 }
 0x2a7   : > { %v3511_v49 = vpop.eup %3510  ;;  %v1540_v51 = vpop.xlane.xlu0 %1539 }
 0x2a8   : > { %v4273_v28 = vmul.f32 %v3511_v49, %v4126_v30  ;;  %v1558_v53 = vadd.f32 1e-09, %v1540_v51  ;;  %3326 = vmatmul.mubr.msk.bf16.vlgmr.msra.gmra.mxu1 %vm1728_vm9, %v1725_v41  ;;  %v2238_v41 = vsel %vm2102_vm10, %v3872_v19, 0  ;;  %v2283_v19 = vsel %vm2102_vm10, %v3887_v25, 0 }
 0x2a9   : > { %v3513_v46 = vpop.eup %3512  ;;  %3336 = vmatpush3.bf16.msra.mxu1 %v2048_v63  ;;  %v1543_v56 = vpop.xlane.xlu1 %1542  ;;  %3337 = vmatprep.mubr.msk.bf16.mxu1 %vm3606_vm5, %v3605_v23 }
 0x2aa   : > { %v4285_v17 = vmul.f32 %v3513_v46, %v4131_v5  ;;  %3518 = vrcp.f32 %v1558_v53  ;;  %v1559_v30 = vadd.f32 1e-09, %v1543_v56  ;;  %v1726_v15 = vpack.c.bf16 %v4273_v28, %v4273_v28  ;;  %3347 = vmatprep.subr.bf16.mxu1 %v3605_v23 }
 0x2ab   : > { %v1602_v50 = vmin.f32 %v4273_v28, %v4276_v45  ;;  %v1694_v11 = vadd.f32 %v4276_v45, %v4273_v28 }
 0x2ac   : > { %3520 = vrcp.f32 %v1559_v30  ;;  %3332 = vmatmul.mubr.msk.bf16.vlgmr.msra.gmra.mxu0 %vm1728_vm9, %v1726_v15  ;;  %v1603_v5 = vmin.f32 %v4285_v17, %v4282_v42  ;;  %v1695_v26 = vadd.f32 %v4282_v42, %v4285_v17  ;;  %v1727_v60 = vpack.c.bf16 %v4285_v17, %v4285_v17 }
 0x2ad   : > { %3342 = vmatpush3.bf16.msra.mxu0 %v2103_v4  ;;  %3343 = vmatprep.mubr.msk.bf16.mxu0 %vm3606_vm5, %v3605_v23  ;;  %1702 = vst.msk [vmem:[#allocation8 + $0x6] sm:$0x1] %vm1010_vm7, %v1694_v11  ;;  %v1591_v4 = vld [vmem:[#allocation9 + $0x3] sm:$0x1]  ;;  %v1622_v61 = vsel %vm1010_vm7, %v1602_v50, 0.0 }
 0x2ae   : > { %3353 = vmatprep.subr.bf16.mxu0 %v3605_v23  ;;  %1703 = vst.msk [vmem:[#allocation8 + $0x7] sm:$0x1] %vm1010_vm7, %v1695_v26  ;;  %v1625_v0 = vsel %vm1010_vm7, %v1603_v5, 0.0 }
 0x2af   : > { %v3515_v54 = vpop.eup %3514  ;;  %v1546_v52 = vpop.xlane.xlu0 %1545 }
 0x2b0   : > { %v1572_v55 = vmul.f32 %v3515_v54, %v4138_v24  ;;  %v1560_v2 = vadd.f32 1e-09, %v1546_v52  ;;  %3338 = vmatmul.mubr.msk.bf16.vlgmr.msra.gmra.mxu1 %vm1728_vm9, %v1727_v60  ;;  %v3534_v54 = vld [vmem:[#allocation3 + $0xa] sm:$0x3] }
 0x2b1   : > { %v3517_v62 = vpop.eup %3516  ;;  %3348 = vmatpush3.bf16.msra.mxu1 %v2148_v10  ;;  %v1549_v32 = vpop.xlane.xlu1 %1548  ;;  %3349 = vmatprep.mubr.msk.bf16.mxu1 %vm3606_vm5, %v3605_v23  ;;  %v2328_v52 = vsel %vm2102_vm10, %v3534_v54, 0 }
 0x2b2   : > { %v4317_v58 = vmul.f32 %v3517_v62, %v4143_v21  ;;  %3522 = vrcp.f32 %v1560_v2  ;;  %v1561_v24 = vadd.f32 1e-09, %v1549_v32  ;;  %v2090_v6 = vpack.c.bf16 %v1572_v55, %v1572_v55  ;;  %3359 = vmatprep.subr.bf16.mxu1 %v3605_v23  ;;  %v1592_v2 = vld [vmem:[#allocation9 + $0x4] sm:$0x1]  ;;  %v3535_v32 = vld [vmem:[#allocation3 + $0xc] sm:$0x3] }
 0x2b3   : > { %v1628_v39 = vmin.f32 %v1572_v55, %v1588_v35  ;;  %v1704_v12 = vadd.f32 %v1588_v35, %v1572_v55  ;;  %v1598_v21 = vmin.f32 %v4202_v48, %v4205_v47  ;;  %v4341_v47 = vld [vmem:[#allocation9 + $0x2] sm:$0x1] }
 0x2b4   : > { %3524 = vrcp.f32 %v1561_v24  ;;  %3344 = vmatmul.mubr.msk.bf16.vlgmr.msra.gmra.mxu0 %vm2098_vm11, %v2090_v6  ;;  %v1629_v18 = vmin.f32 %v4317_v58, %v4314_v13  ;;  %v1705_v14 = vadd.f32 %v4314_v13, %v4317_v58  ;;  %v2091_v16 = vpack.c.bf16 %v4317_v58, %v4317_v58  ;;  %v4369_v24 = vld [vmem:[#allocation9 + $0x5] sm:$0x1] }
 0x2b5   : > { %v1636_v1 = vsel %vm1475_vm8, %v1628_v39, 0.0  ;;  %1712 = vst.msk [vmem:[#allocation9] sm:$0x1] %vm1475_vm8, %v1704_v12  ;;  %3354 = vmatpush3.bf16.msra.mxu0 %v2193_v7  ;;  %3355 = vmatprep.mubr.msk.bf16.mxu0 %vm3606_vm5, %v3605_v23  ;;  %v1610_v46 = vsel %vm1010_vm7, %v1598_v21, 0.0  ;;  %v2373_v7 = vsel %vm2102_vm10, %v3535_v32, 0 }
 0x2b6   : > { %1637 = vadd.xlane.f32.xlu1 %v1636_v1  ;;  %3365 = vmatprep.subr.bf16.mxu0 %v3605_v23  ;;  %1713 = vst.msk [vmem:[#allocation9 + $0x1] sm:$0x1] %vm1475_vm8, %v1705_v14 }
 0x2b7   : > { %v3519_v63 = vpop.eup %3518  ;;  %v1552_v49 = vpop.xlane.xlu0 %1551 }
 0x2b8   : > { %v4338_v51 = vmul.f32 %v3519_v63, %v4150_v37  ;;  %v1562_v48 = vadd.f32 1e-09, %v1552_v49  ;;  %3350 = vmatmul.mubr.msk.bf16.vlgmr.msra.gmra.mxu1 %vm2098_vm11, %v2091_v16  ;;  %v3536_v16 = vld [vmem:[#allocation3 + $0xe] sm:$0x3]  ;;  %v4389_v49 = vld [vmem:[#allocation9 + $0x6] sm:$0x1] }
 0x2b9   : > { %v3521_v53 = vpop.eup %3520  ;;  %3360 = vmatpush3.bf16.msra.mxu1 %v2238_v41  ;;  %v1555_v56 = vpop.xlane.xlu1 %1554  ;;  %3361 = vmatprep.mubr.msk.bf16.mxu1 %vm3606_vm5, %v3605_v23  ;;  %v2418_v41 = vsel %vm2102_vm10, %v3536_v16, 0 }
 0x2ba   : > { %3526 = vrcp.f32 %v1562_v48  ;;  %1611 = vadd.xlane.f32.xlu1 %v1610_v46  ;;  %v1563_v37 = vadd.f32 1e-09, %v1555_v56  ;;  %v2092_v30 = vpack.c.bf16 %v4338_v51, %v4338_v51  ;;  %3371 = vmatprep.subr.bf16.mxu1 %v3605_v23  ;;  %v1575_v15 = vmul.f32 %v3521_v53, %v4155_v43  ;;  %v4397_v46 = vld [vmem:[#allocation9 + $0x7] sm:$0x1] }
 0x2bb   : > { %v1630_v11 = vmin.f32 %v4338_v51, %v4341_v47  ;;  %v1706_v26 = vadd.f32 %v4341_v47, %v4338_v51 }
 0x2bc   : > { %3528 = vrcp.f32 %v1563_v37  ;;  %3356 = vmatmul.mubr.msk.bf16.vlgmr.msra.gmra.mxu0 %vm2098_vm11, %v2092_v30  ;;  %v1631_v25 = vmin.f32 %v1575_v15, %v1591_v4  ;;  %v1707_v60 = vadd.f32 %v1591_v4, %v1575_v15  ;;  %v2093_v43 = vpack.c.bf16 %v1575_v15, %v1575_v15  ;;  %v3458_v30 = vld [vmem:[#allocation4 + $0x8] sm:$0xff]  }
 0x2bd   : > { %3366 = vmatpush3.bf16.msra.mxu0 %v2283_v19  ;;  %3367 = vmatprep.mubr.msk.bf16.mxu0 %vm3606_vm5, %v3605_v23  ;;  %1714 = vst.msk [vmem:[#allocation9 + $0x2] sm:$0x1] %vm1475_vm8, %v1706_v26  ;;  %v3459_v26 = vld [vmem:[#allocation4] sm:$0xff]  }
 0x2be   : > { %v1645_v10 = vsel %vm1475_vm8, %v1631_v25, 0.0  ;;  %1715 = vst.msk [vmem:[#allocation9 + $0x3] sm:$0x1] %vm1475_vm8, %v1707_v60  ;;  %3377 = vmatprep.subr.bf16.mxu0 %v3605_v23  ;;  %v3460_v25 = vld [vmem:[#allocation4 + $0x18] sm:$0xff]   ;;  %v3461_v60 = vld [vmem:[#allocation4 + $0x10] sm:$0xff]  }
 0x2bf   : > { %v3523_v55 = vpop.eup %3522  ;;  %1646 = vadd.xlane.f32.xlu1 %v1645_v10 }
 0x2c0   : > { %v1576_v35 = vmul.f32 %v3523_v55, %v4160_v33  ;;  %3362 = vmatmul.mubr.msk.bf16.vlgmr.msra.gmra.mxu1 %vm2098_vm11, %v2093_v43 }
 0x2c1   : > { %v3525_v62 = vpop.eup %3524  ;;  %3372 = vmatpush3.bf16.msra.mxu1 %v2328_v52  ;;  %3373 = vmatprep.mubr.msk.bf16.mxu1 %vm3606_vm5, %v3605_v23 }
 0x2c2   : > { %v4372_v6 = vmul.f32 %v3525_v62, %v4165_v34  ;;  %v2094_v39 = vpack.c.bf16 %v1576_v35, %v1576_v35  ;;  %v1632_v12 = vmin.f32 %v1576_v35, %v1592_v2  ;;  %v1708_v14 = vadd.f32 %v1592_v2, %v1576_v35  ;;  %3383 = vmatprep.subr.bf16.mxu1 %v3605_v23 }
 0x2c4   : > { %3368 = vmatmul.mubr.msk.bf16.vlgmr.msra.gmra.mxu0 %vm2098_vm11, %v2094_v39  ;;  %v1648_v33 = vsel %vm1475_vm8, %v1632_v12, 0.0  ;;  %1716 = vst.msk [vmem:[#allocation9 + $0x4] sm:$0x1] %vm1475_vm8, %v1708_v14  ;;  %v1633_v1 = vmin.f32 %v4372_v6, %v4369_v24  ;;  %v1709_v21 = vadd.f32 %v4369_v24, %v4372_v6  ;;  %v2095_v34 = vpack.c.bf16 %v4372_v6, %v4372_v6 }
 0x2c5   : > { %1649 = vadd.xlane.f32.xlu1 %v1648_v33  ;;  %3378 = vmatpush3.bf16.msra.mxu0 %v2373_v7 }
 0x2c6   : > { %3379 = vmatprep.mubr.msk.bf16.mxu0 %vm3606_vm5, %v3605_v23  ;;  %3389 = vmatprep.subr.bf16.mxu0 %v3605_v23  ;;  %1717 = vst.msk [vmem:[#allocation9 + $0x5] sm:$0x1] %vm1475_vm8, %v1709_v21  ;;  %v1651_v44 = vsel %vm1475_vm8, %v1633_v1, 0.0 }
 0x2c7   : > { %v3527_v63 = vpop.eup %3526 }
 0x2c8   : > { %v4392_v48 = vmul.f32 %v3527_v63, %v4170_v3  ;;  %3374 = vmatmul.mubr.msk.bf16.vlgmr.msra.gmra.mxu1 %vm2098_vm11, %v2095_v34 }
 0x2c9   : > { %v3529_v53 = vpop.eup %3528  ;;  %3384 = vmatpush3.bf16.msra.mxu1 %v2418_v41  ;;  %3385 = vmatprep.mubr.msk.bf16.mxu1 %vm3606_vm5, %v3605_v23 }
 0x2ca   : > { %v4400_v56 = vmul.f32 %v3529_v53, %v4175_v59  ;;  %v2096_v19 = vpack.c.bf16 %v4392_v48, %v4392_v48  ;;  %3397 = vmatprep.subr.bf16.mxu1 %v3605_v23  ;;  %v1634_v3 = vmin.f32 %v4392_v48, %v4389_v49  ;;  %v1710_v4 = vadd.f32 %v4389_v49, %v4392_v48 }
 0x2cc   : > { %3380 = vmatmul.mubr.msk.bf16.vlgmr.msra.gmra.mxu0 %vm2098_vm11, %v2096_v19  ;;  %1718 = vst.msk [vmem:[#allocation9 + $0x6] sm:$0x1] %vm1475_vm8, %v1710_v4  ;;  %v1635_v37 = vmin.f32 %v4400_v56, %v4397_v46  ;;  %v1711_v59 = vadd.f32 %v4397_v46, %v4400_v56  ;;  %v2097_v15 = vpack.c.bf16 %v4400_v56, %v4400_v56  ;;  %v1654_v29 = vsel %vm1475_vm8, %v1634_v3, 0.0 }
 0x2cd   : > { %3393 = vmatprep.mubr.msk.bf16.mxu0 %vm3606_vm5, %v3605_v23  ;;  %3390 = vmatpush3.bf16.msra.mxu0 %v3460_v25 }
 0x2ce   : > { %1719 = vst.msk [vmem:[#allocation9 + $0x7] sm:$0x1] %vm1475_vm8, %v1711_v59  ;;  %3391 = vmatprep.subr.bf16.mxu0 %v3605_v23 }
 0x2d0   : > { %3386 = vmatmul.mubr.msk.bf16.vlgmr.msra.gmra.mxu1 %vm2098_vm11, %v2097_v15 }
 0x2d1   : > { %3398 = vmatpush3.bf16.msra.mxu1 %v3458_v30  ;;  %3401 = vmatprep.mubr.msk.bf16.mxu1 %vm3606_vm5, %v3605_v23 }
 0x2d2   : > { %3399 = vmatprep.subr.bf16.mxu1 %v3605_v23  ;;  %3392 = vmatpush3.bf16.msra.mxu0 %v3461_v60 }
 0x2d3   : > { %3405 = vmatprep.subr.bf16.mxu0 %v3605_v23 }
 0x2d5   : > { %3400 = vmatpush3.bf16.msra.mxu1 %v3459_v26 }
 0x2d8   : > { %3402 = vmatmul.mubr.msk.bf16.vlgmr.msra.gmra.mxu1 %vm606_vm4, %v3787_v38 }
 0x31e   : > { %v1606_v42 = vpop.xlane.xlu1 %1605 }
 0x33f   : > { %v1638_v17 = vpop.xlane.xlu1 %1637 }
 0x343   : > { %v1612_v5 = vpop.xlane.xlu1 %1611 }
 0x348   : > { %v1647_v58 = vpop.xlane.xlu1 %1646 }
 0x34e   : > { %v1650_v51 = vpop.xlane.xlu1 %1649 }
 0x354   : > { %v1769_v10 = vpop.f32.mrf.mxu0 }
 0x356   : > { %v3297_v43 = vpop.f32.mrf.mxu0 }
 0x357   : > { %v2464_v43 = vpack.c.bf16 %v1769_v10, %v1769_v10 }
 0x358   : > { %v1772_v54 = vpop.f32.mrf.mxu0  ;;  %v1814_v52 = vpop.f32.mrf.mxu1 }
 0x359   : > { %v2465_v34 = vpack.c.bf16 %v1814_v52, %v1814_v52 }
 0x35a   : > { %v3298_v55 = vpop.f32.mrf.mxu0  ;;  %v3303_v2 = vpop.f32.mrf.mxu1 }
 0x35b   : > { %v2486_v30 = vunpack.c.l.b16 %v2465_v34 }
 0x35c   : > { %v1817_v35 = vpop.f32.mrf.mxu1  ;;  %v1859_v62 = vpop.f32.mrf.mxu0 }
 0x35d   : > { %v2466_v16 = vpack.c.bf16 %v1859_v62, %v1859_v62 }
 0x35e   : > { %v3304_v32 = vpop.f32.mrf.mxu1  ;;  %v3309_v7 = vpop.f32.mrf.mxu0 }
 0x35f   : > { %v2487_v26 = vunpack.c.l.b16 %v2466_v16  ;;  %v2493_v32 = vrot.slane %v2486_v30, 7 }
 0x360   : > { %v1862_v39 = vpop.f32.mrf.mxu0  ;;  %v1904_v38 = vpop.f32.mrf.mxu1 }
 0x361   : > { %v2467_v53 = vpack.c.bf16 %v1904_v38, %v1904_v38  ;;  %v2496_v62 = vrot.slane %v2487_v26, 6 }
 0x362   : > { %v3310_v12 = vpop.f32.mrf.mxu0  ;;  %v3315_v14 = vpop.f32.mrf.mxu1 }
 0x363   : > { %v2488_v54 = vunpack.c.l.b16 %v2467_v53  ;;  %v2485_v12 = vunpack.c.l.b16 %v2464_v43 }
 0x364   : > { %v1907_v33 = vpop.f32.mrf.mxu1  ;;  %v1949_v21 = vpop.f32.mrf.mxu0 }
 0x365   : > { %v2468_v19 = vpack.c.bf16 %v1949_v21, %v1949_v21  ;;  %v2499_v14 = vrot.slane %v2488_v54, 5  ;;  %v2495_v10 = vsel %vm2494_vm12, %v2493_v32, %v2485_v12 }
 0x366   : > { %v3316_v41 = vpop.f32.mrf.mxu1  ;;  %v3321_v63 = vpop.f32.mrf.mxu0  ;;  %v2498_v53 = vsel %vm2497_vm13, %v2496_v62, %v2495_v10 }
 0x367   : > { %v2489_v55 = vunpack.c.l.b16 %v2468_v19  ;;  %v2501_v30 = vsel %vm2500_vm14, %v2499_v14, %v2498_v53  ;;  %v3463_v14 = vld [vmem:[#allocation4 + $0x20] sm:$0xff]  }
 0x368   : > { %v1952_v4 = vpop.f32.mrf.mxu0  ;;  %v1994_v59 = vpop.f32.mrf.mxu1 }
 0x369   : > { %v2469_v15 = vpack.c.bf16 %v1994_v59, %v1994_v59  ;;  %v2502_v21 = vrot.slane %v2489_v55, 4 }
 0x36a   : > { %v3322_v25 = vpop.f32.mrf.mxu0  ;;  %v3327_v60 = vpop.f32.mrf.mxu1 }
 0x36b   : > { %v2490_v7 = vunpack.c.l.b16 %v2469_v15  ;;  %v2504_v26 = vsel %vm2503_vm15, %v2502_v21, %v2501_v30 }
 0x36c   : > { %v1997_v2 = vpop.f32.mrf.mxu1  ;;  %v2039_v35 = vpop.f32.mrf.mxu0 }
 0x36d   : > { %v2470_v52 = vpack.c.bf16 %v2039_v35, %v2039_v35  ;;  %v2505_v41 = vrot.slane %v2490_v7, 3  ;;  %v3462_v7 = vld [vmem:[#allocation4 + $0x28] sm:$0xff]  }
 0x36e   : > { %v3328_v39 = vpop.f32.mrf.mxu1  ;;  %v3333_v38 = vpop.f32.mrf.mxu0 }
 0x36f   : > { %v2491_v33 = vunpack.c.l.b16 %v2470_v52  ;;  %v2507_v43 = vsel %vm2506_vm0, %v2505_v41, %v2504_v26 }
 0x370   : > { %v2042_v34 = vpop.f32.mrf.mxu0  ;;  %v2084_v16 = vpop.f32.mrf.mxu1 }
 0x371   : > { %v2471_v63 = vpack.c.bf16 %v2084_v16, %v2084_v16  ;;  %v2508_v19 = vrot.slane %v2491_v33, 2 }
 0x372   : > { %v3334_v4 = vpop.f32.mrf.mxu0  ;;  %v3339_v59 = vpop.f32.mrf.mxu1 }
 0x373   : > { %v2492_v15 = vunpack.c.l.b16 %v2471_v63  ;;  %v2510_v55 = vsel %vm2509_vm1, %v2508_v19, %v2507_v43 }
 0x374   : > { %v2087_v25 = vpop.f32.mrf.mxu1  ;;  %v2139_v60 = vpop.f32.mrf.mxu0 }
 0x375   : > { %v2511_v54 = vrot.slane %v2492_v15, 1 }
 0x376   : > { %v3340_v2 = vpop.f32.mrf.mxu1  ;;  %v3345_v35 = vpop.f32.mrf.mxu0 }
 0x377   : > { %v2513_v32 = vsel %vm2512_vm2, %v2511_v54, %v2510_v55 }
 0x378   : > { %v2514_v52 = vpack.c.b16 %v2513_v32, %v2513_v32  ;;  %v2142_v62 = vpop.f32.mrf.mxu0  ;;  %v2184_v39 = vpop.f32.mrf.mxu1 }
 0x379   : > { %v2626_v59 = vpack.c.bf16 %v2184_v39, %v2184_v39 }
 0x37a   : > { %v3346_v38 = vpop.f32.mrf.mxu0  ;;  %v3351_v12 = vpop.f32.mrf.mxu1  ;;  %3394 = vmatmul.mubr.msk.bf16.vlgmr.msra.gmra.mxu0 %vm606_vm4, %v2514_v52  ;;  %v2625_v52 = vpack.c.bf16 %v2139_v60, %v2139_v60 }
 0x37b   : > { %3406 = vmatpush3.bf16.msra.mxu0 %v3462_v7  ;;  %3409 = vmatprep.mubr.msk.bf16.mxu0 %vm3606_vm5, %v3605_v23  ;;  %v2647_v2 = vunpack.c.l.b16 %v2626_v59  ;;  %vm1686_vm5 = vcmask 0  }
 0x37c   : > { %v2187_v33 = vpop.f32.mrf.mxu1  ;;  %v2229_v21 = vpop.f32.mrf.mxu0  ;;  %3407 = vmatprep.subr.bf16.mxu0 %v3605_v23 }
 0x37d   : > { %v2627_v30 = vpack.c.bf16 %v2229_v21, %v2229_v21  ;;  %v2654_v33 = vrot.slane %v2647_v2, 7 }
 0x37e   : > { %v3352_v34 = vpop.f32.mrf.mxu1  ;;  %v3357_v16 = vpop.f32.mrf.mxu0 }
 0x37f   : > { %3408 = vmatpush3.bf16.msra.mxu0 %v3463_v14  ;;  %v2648_v23 = vunpack.c.l.b16 %v2627_v30 }
 0x380   : > { %v2232_v10 = vpop.f32.mrf.mxu0  ;;  %v2274_v41 = vpop.f32.mrf.mxu1 }
 0x381   : > { %v2628_v25 = vpack.c.bf16 %v2274_v41, %v2274_v41  ;;  %v2656_v21 = vrot.slane %v2648_v23, 6  ;;  %v2646_v41 = vunpack.c.l.b16 %v2625_v52 }
 0x382   : > { %v3358_v63 = vpop.f32.mrf.mxu0  ;;  %v3363_v53 = vpop.f32.mrf.mxu1 }
 0x383   : > { %v2649_v62 = vunpack.c.l.b16 %v2628_v25  ;;  %v2655_v30 = vsel %vm2494_vm12, %v2654_v33, %v2646_v41 }
 0x384   : > { %v2277_v19 = vpop.f32.mrf.mxu1  ;;  %v2319_v4 = vpop.f32.mrf.mxu0 }
 0x385   : > { %v2629_v43 = vpack.c.bf16 %v2319_v4, %v2319_v4  ;;  %v2658_v63 = vrot.slane %v2649_v62, 5 }
 0x386   : > { %v3364_v15 = vpop.f32.mrf.mxu1  ;;  %v3369_v26 = vpop.f32.mrf.mxu0 }
 0x387   : > { %v2650_v38 = vunpack.c.l.b16 %v2629_v43  ;;  %v2657_v26 = vsel %vm2497_vm13, %v2656_v21, %v2655_v30 }
 0x388   : > { %v2322_v54 = vpop.f32.mrf.mxu0  ;;  %v2364_v55 = vpop.f32.mrf.mxu1 }
 0x389   : > { %v2630_v35 = vpack.c.bf16 %v2364_v55, %v2364_v55  ;;  %v2660_v19 = vrot.slane %v2650_v38, 4  ;;  %v2659_v55 = vsel %vm2500_vm14, %v2658_v63, %v2657_v26  ;;  %v1607_v26 = vsel %vm1010_vm7, %v1597_v8, 0.0 }
 0x38a   : > { %v3370_v32 = vpop.f32.mrf.mxu0  ;;  %v3375_v7 = vpop.f32.mrf.mxu1  ;;  %v1619_v8 = vsel %vm1010_vm7, %v1601_v27, 0.0  ;;  %v1657_v27 = vsel %vm1475_vm8, %v1635_v37, 0.0 }
 0x38b   : > { %v2651_v34 = vunpack.c.l.b16 %v2630_v35  ;;  %v2661_v35 = vsel %vm2503_vm15, %v2660_v19, %v2659_v55  ;;  %v3093_v19 = vld [vmem:[%s4537_s9] ss:$0 sm:$0xff] }
 0x38c   : > { %v2367_v12 = vpop.f32.mrf.mxu1  ;;  %v2409_v14 = vpop.f32.mrf.mxu0 }
 0x38d   : > { %v2631_v39 = vpack.c.bf16 %v2409_v14, %v2409_v14  ;;  %v2662_v15 = vrot.slane %v2651_v34, 3 }
 0x38e   : > { %v3376_v16 = vpop.f32.mrf.mxu1  ;;  %v3381_v10 = vpop.f32.mrf.mxu0 }
 0x38f   : > { %v2652_v53 = vunpack.c.l.b16 %v2631_v39  ;;  %v2663_v32 = vsel %vm2506_vm0, %v2662_v15, %v2661_v35 }
 0x390   : > { %v2412_v4 = vpop.f32.mrf.mxu0  ;;  %v2454_v59 = vpop.f32.mrf.mxu1 }
 0x391   : > { %v2632_v60 = vpack.c.bf16 %v2454_v59, %v2454_v59  ;;  %v2664_v25 = vrot.slane %v2652_v53, 2 }
 0x392   : > { %v3382_v43 = vpop.f32.mrf.mxu0  ;;  %v3387_v54 = vpop.f32.mrf.mxu1 }
 0x393   : > { %v2653_v2 = vunpack.c.l.b16 %v2632_v60  ;;  %v2665_v52 = vsel %vm2509_vm1, %v2664_v25, %v2663_v32  ;;  %v1639_v25 = vsel %vm1475_vm8, %v1629_v18, 0.0  ;;  %v1642_v43 = vsel %vm1475_vm8, %v1630_v11, 0.0 }
 0x394   : > { %v2457_v23 = vpop.f32.mrf.mxu1  ;;  %v1660_v11 = vadd.f32 %v1638_v17, %v1606_v42 }
 0x395   : > { %v2666_v7 = vrot.slane %v2653_v2, 1 }
 0x396   : > { %v3388_v62 = vpop.f32.mrf.mxu1  ;;  %v1670_v46 = vsel %vm1669_vm3, %v1660_v11, 0.0 }
 0x397   : > { %v2667_v38 = vsel %vm2512_vm2, %v2666_v7, %v2665_v52 }
 0x398   : > { %v2668_v12 = vpack.c.b16 %v2667_v38, %v2667_v38  ;;  %v2619_v14 = vpop.f32.mrf.mxu1 }
 0x39a   : > { %v3403_v33 = vpop.f32.mrf.mxu1  ;;  %3410 = vmatmul.mubr.msk.bf16.vlgmr.msra.gmra.mxu0 %vm606_vm4, %v2668_v12 }
 0x39c   : > { %v2622_v34 = vpop.f32.mrf.mxu1 }
 0x39e   : > { %v3404_v39 = vpop.f32.mrf.mxu1 }
 0x43a   : > { %v2564_v21 = vpop.f32.mrf.mxu0 }
 0x43b   : > { %v2620_v63 = vadd.f32 %v2619_v14, %v2564_v21 }
 0x43c   : > { %v3395_v16 = vpop.f32.mrf.mxu0 }
 0x43e   : > { %v2567_v10 = vpop.f32.mrf.mxu0 }
 0x440   : > { %v3396_v41 = vpop.f32.mrf.mxu0 }
 0x45a   : > { %v2718_v53 = vpop.f32.mrf.mxu0 }
 0x45b   : > { %v2724_v4 = vadd.f32 %v2718_v53, %v2620_v63  ;;  %v1668_v63 = vld [vmem:[#allocation13] sm:$0x1] }
 0x45c   : > { %v3411_v59 = vpop.f32.mrf.mxu0 }
 0x45d   : > { %v2732_v30 = vadd.f32 %v3093_v19, %v2724_v4 }
 0x45e   : > { %v2721_v15 = vpop.f32.mrf.mxu0 }
 0x45f   : > { %2733 = vmax.xlane.f32.xlu0 %v2732_v30 }
 0x460   : > { %v3412_v60 = vpop.f32.mrf.mxu0 }
 0x463   : > { %1608 = vadd.xlane.f32.xlu0 %v1607_v26 }
 0x467   : > { %1640 = vadd.xlane.f32.xlu0 %v1639_v25 }
 0x46b   : > { %1643 = vadd.xlane.f32.xlu0 %v1642_v43 }
 0x46f   : > { %1614 = vadd.xlane.f32.xlu0 %v1613_v40 }
 0x473   : > { %1617 = vadd.xlane.f32.xlu0 %v1616_v36 }
 0x477   : > { %1620 = vadd.xlane.f32.xlu0 %v1619_v8 }
 0x47b   : > { %1623 = vadd.xlane.f32.xlu0 %v1622_v61 }
 0x47f   : > { %1626 = vadd.xlane.f32.xlu0 %v1625_v0 }
 0x4e8   : > { %v2734_v57 = vpop.xlane.xlu0 %2733 }
 0x4e9   : > { %v2735_v22 = vsub.f32 %v2732_v30, %v2734_v57 }
 0x4eb   : > { %v2736_v20 = vmul.f32 1.442695, %v2735_v22 }
 0x4ec   : > { %v1609_v28 = vpop.xlane.xlu0 %1608 }
 0x4ed   : > { %3530 = vpow2.f32 %v2736_v20 }
 0x4f0   : > { %v1641_v45 = vpop.xlane.xlu0 %1640 }
 0x4f1   : > { %v1661_v47 = vadd.f32 %v1641_v45, %v1609_v28 }
 0x4f3   : > { %v1671_v49 = vsel %vm1669_vm3, %v1661_v47, 0.0 }
 0x4f4   : > { %v1644_v50 = vpop.xlane.xlu0 %1643  ;;  %v1672_v37 = vadd.f32 %v1671_v49, %v1670_v46 }
 0x4f5   : > { %v1662_v24 = vadd.f32 %v1644_v50, %v1612_v5 }
 0x4f7   : > { %v1673_v56 = vsel %vm1669_vm3, %v1662_v24, 0.0 }
 0x4f8   : > { %v1615_v13 = vpop.xlane.xlu0 %1614  ;;  %v1674_v35 = vadd.f32 %v1673_v56, %v1672_v37 }
 0x4f9   : > { %v1663_v48 = vadd.f32 %v1647_v58, %v1615_v13 }
 0x4fa   : > { %v3531_v9 = vpop.eup %3530 }
 0x4fb   : > { %2738 = vadd.xlane.f32.xlu1 %v3531_v9  ;;  %v1675_v55 = vsel %vm1669_vm3, %v1663_v48, 0.0 }
 0x4fc   : > { %v1618_v18 = vpop.xlane.xlu0 %1617  ;;  %v1676_v7 = vadd.f32 %v1675_v55, %v1674_v35 }
 0x4fd   : > { %v1664_v3 = vadd.f32 %v1650_v51, %v1618_v18 }
 0x4ff   : > { %1652 = vadd.xlane.f32.xlu1 %v1651_v44  ;;  %v1677_v32 = vsel %vm1669_vm3, %v1664_v3, 0.0 }
 0x500   : > { %v1621_v6 = vpop.xlane.xlu0 %1620  ;;  %v1678_v12 = vadd.f32 %v1677_v32, %v1676_v7 }
 0x503   : > { %1655 = vadd.xlane.f32.xlu1 %v1654_v29 }
 0x504   : > { %v1624_v23 = vpop.xlane.xlu0 %1623 }
 0x507   : > { %1658 = vadd.xlane.f32.xlu1 %v1657_v27 }
 0x508   : > { %v1627_v33 = vpop.xlane.xlu0 %1626 }
 0x584   : > { %v2739_v1 = vpop.xlane.xlu1 %2738 }
 0x585   : > { %3532 = vrcp.f32 %v2739_v1 }
 0x588   : > { %v1653_v54 = vpop.xlane.xlu1 %1652 }
 0x589   : > { %v1665_v2 = vadd.f32 %v1653_v54, %v1621_v6 }
 0x58b   : > { %v1679_v62 = vsel %vm1669_vm3, %v1665_v2, 0.0 }
 0x58c   : > { %v1656_v52 = vpop.xlane.xlu1 %1655  ;;  %v1680_v34 = vadd.f32 %v1679_v62, %v1678_v12 }
 0x58d   : > { %v1666_v38 = vadd.f32 %v1656_v52, %v1624_v23 }
 0x58f   : > { %v1681_v14 = vsel %vm1669_vm3, %v1666_v38, 0.0 }
 0x590   : > { %v1659_v39 = vpop.xlane.xlu1 %1658  ;;  %v1682_v10 = vadd.f32 %v1681_v14, %v1680_v34 }
 0x591   : > { %v1667_v21 = vadd.f32 %v1659_v39, %v1627_v33 }
 0x592   : > { %v3533_v16 = vpop.eup %3532 }
 0x593   : > { %v2741_v41 = vmul.f32 %v3533_v16, %v3531_v9  ;;  %v1683_v53 = vsel %vm1669_vm3, %v1667_v21, 0.0 }
 0x594   : > { %v1684_v19 = vadd.f32 %v1683_v53, %v1682_v10  ;;  %2747 = sbr.rel (%p3094_p10) target bundleno = 1435 (0x59b), region = 184 }
 0x595   : > { %2742 = vst [vmem:[%s3695_s30] sm:$0xff] %v2741_v41 }
 0x596   : > { %v1685_v4 = vadd.f32 %v1684_v19, %v1668_v63 }
 0x598   : > { %1687 = vst.msk [vmem:[#allocation13] sm:$0x1] %vm1686_vm5, %v1685_v4 }
 0x599   : > { %v2748_v59 = vld [vmem:[%s3690_s27] sm:$0xff] }
 0x59a   : > { %2749 = vst.msk [vmem:[#allocation10] sm:$0xff] %vm606_vm4, %v2748_v59 }
 0x59b PF: > { %s2750_s12 = sld [smem:[#allocation12 + %s3681_s0]] }
 0x5a1   : > { %p3095_p11 = scmp.ne.s32.totalorder %s2750_s12, 0 }
 0x5a3   : > { %2754 = sbr.rel (%p3095_p11) target bundleno = 2075 (0x81b), region = 188 }
 0x5a8   : > { %2757 = vmax.xlane.f32.xlu0 %v2741_v41  ;;  %v2756_v30 = vand.u32 127, %v524_v31  ;;  %v3537_v43 = vld [vmem:[#allocation5 + $0x38] sm:$0xff]   ;;  %v3608_v40 = vmov 0.0   ;;  %v3538_v36 = vld [vmem:[#allocation5 + $0x30] sm:$0xff]   ;;  %v3539_v8 = vld [vmem:[#allocation5 + $0x28] sm:$0xff]   ;;  %vm3609_vm8 = vmmov 0  }
 0x5a9   : > { %3413 = vmatprep.subr.bf16.mxu0 %v3608_v40  ;;  %v3540_v61 = vld [vmem:[#allocation5 + $0x20] sm:$0xff]   ;;  %v3541_v31 = vld [vmem:[#allocation5 + $0x18] sm:$0xff]   ;;  %v3542_v0 = vld [vmem:[#allocation5 + $0x10] sm:$0xff]   ;;  %3429 = vmatprep.mubr.msk.bf16.mxu0 %vm3609_vm8, %v3608_v40  ;;  %v3610_v50 = vmov 1.0|1.0  }
 0x5aa   : > { %3414 = vmatpush3.bf16.msra.mxu0 %v3537_v43  ;;  %v3543_v57 = vld [vmem:[#allocation5 + $0x8] sm:$0xff]   ;;  %v3544_v29 = vld [vmem:[#allocation5] sm:$0xff]  }
 0x5ab   : > { %3415 = vmatprep.subr.bf16.mxu0 %v3608_v40 }
 0x5ae   : > { %3416 = vmatpush3.bf16.msra.mxu0 %v3538_v36 }
 0x5af   : > { %3417 = vmatprep.subr.bf16.mxu0 %v3608_v40 }
 0x5b2   : > { %3418 = vmatpush3.bf16.msra.mxu0 %v3539_v8 }
 0x5b3   : > { %3419 = vmatprep.subr.bf16.mxu0 %v3608_v40 }
 0x5b6   : > { %3420 = vmatpush3.bf16.msra.mxu0 %v3540_v61 }
 0x5b7   : > { %3421 = vmatprep.subr.bf16.mxu0 %v3608_v40 }
 0x5ba   : > { %3422 = vmatpush3.bf16.msra.mxu0 %v3541_v31 }
 0x5bb   : > { %3423 = vmatprep.subr.bf16.mxu0 %v3608_v40 }
 0x5be   : > { %3424 = vmatpush3.bf16.msra.mxu0 %v3542_v0 }
 0x5bf   : > { %3425 = vmatprep.subr.bf16.mxu0 %v3608_v40 }
 0x5c2   : > { %3426 = vmatpush3.bf16.msra.mxu0 %v3543_v57 }
 0x5c3   : > { %3427 = vmatprep.subr.bf16.mxu0 %v3608_v40 }
 0x5c6   : > { %3428 = vmatpush3.bf16.msra.mxu0 %v3544_v29 }
 0x631   : > { %v2758_v15 = vpop.xlane.xlu0 %2757 }
 0x632   : > { %vm2759_vm6 = vcmp.ge.f32.partialorder %v2741_v41, %v2758_v15 }
 0x633   : > { %v2760_v60 = vsel %vm2759_vm6, %v2756_v30, 128 }
 0x634   : > { %v2762_v26 = vshra.s32 %v2760_v60, 16  ;;  %v2761_v22 = vand.u32 65535, %v2760_v60 }
 0x636   : > { %v2764_v25 = vcvt.s32.f32 %v2762_v26  ;;  %v2763_v9 = vcvt.s32.f32 %v2761_v22 }
 0x638   : > { %2765 = vmin.xlane.f32.xlu0 %v2764_v25 }
 0x6c1   : > { %v2766_v20 = vpop.xlane.xlu0 %2765 }
 0x6c2   : > { %vm2767_vm7 = vcmp.eq.f32.partialorder %v2764_v25, %v2766_v20  ;;  %v2772_v27 = vcvt.f32.s32 %v2766_v20 }
 0x6c3   : > { %v2768_v44 = vsel %vm2767_vm7, %v2763_v9, inf }
 0x6c4   : > { %2769 = vmin.xlane.f32.xlu1 %v2768_v44  ;;  %v2773_v45 = vshll.u32 %v2772_v27, 16 }
 0x74d   : > { %v2770_v28 = vpop.xlane.xlu1 %2769 }
 0x74e   : > { %v2771_v42 = vcvt.f32.s32 %v2770_v28 }
 0x750   : > { %v2774_v17 = vadd.s32 %v2773_v45, %v2771_v42 }
 0x752   : > { %vm2775_vm9 = vcmp.eq.s32.totalorder %v2756_v30, %v2774_v17 }
 0x753   : > { %vm3105_vm10 = vmpackc.low %vm2775_vm9, %vm2775_vm9 }
 0x754   : > { %3430 = vmatmul.mubr.msk.bf16.vlgmr.msra.gmra.mxu0 %vm3105_vm10, %v3610_v50 }
 0x814   : > { %v2877_v5 = vpop.f32.mrf.mxu0 }
 0x815   : > { %2883 = vst.msk [vmem:[#allocation10] sm:$0xff] %vm606_vm4, %v2877_v5 }
 0x816   : > { %v3431_v13 = vpop.f32.mrf.mxu0 }
 0x818   : > { %v2880_v58 = vpop.f32.mrf.mxu0 }
 0x81a   : > { %v3432_v18 = vpop.f32.mrf.mxu0 }
 0x81b PF: > { %v2884_v51 = vld [vmem:[#allocation7] sm:$0xff]  ;;  %p3439_p12 = scmp.eq.s32.totalorder %s3681_s0, 5  ;;  %s3611_s27 = smov [#allocation13]  }
 0x81c   : > { %v2885_v47 = vld [vmem:[#allocation10] sm:$0xff]  ;;  %s2902_s30 = sshll.u32 %s3611_s27, 4  ;;  %s2903_s30 = int_to_ptr.vmem [resolvable:$true] %s2902_s30 }
 0x81d   : > { %v2886_v11 = vadd.f32 %v2885_v47, %v2884_v51  ;;  %s3557_s13 = scalar_lea.vmem %s2903_s30, 16  ;;  %s3563_s14 = scalar_lea.vmem %s2903_s30, 32 }
 0x81e   : > { %p3558_p13 = scmp.ne.s32.totalorder %s2903_s30, %s3557_s13  ;;  %p3564_p2 = scmp.lt.s32.totalorder %s2903_s30, %s2903_s30 }
 0x81f   : > { %2887 = vst.msk [vmem:[#allocation7] sm:$0xff] %vm606_vm4, %v2886_v11  ;;  %p3565_p3 = scmp.lt.s32.totalorder %s3563_s14, %s3557_s13 }
 0x820   : > { %p3559_p0 = pnand %p3558_p13, %p3439_p12 }
 0x821   : > { %p3566_p4 = por %p3565_p3, %p3564_p2 }
 0x822   : > { %p3560_p1 = pneg %p3559_p0 }
 0x824   : > { %p3567_p5 = pnand %p3566_p4, %p3560_p1 }
 0x826   : > { %3570 = shalt.err (!%p3567_p5)
}
 0x827   : > { %3436 = dma.vmem_to_hbm [thread:$0]  (%p3439_p12), %s2903_s30, 16, %s4539_s11, [#allocation14]  }
 0x828   : > { %3596 = dma.done.wait (%p3439_p12), [#allocation14], 16  }
 0x829   : > { %3598 = vsyncadd (%p3439_p12), [#allocation14], 4294967280 }
 0x82a PF: > { %s29_s22 = sadd.s32 1, %s3601_s22  }
 0x82b   : > { %p26_p6 = scmp.ge.s32.totalorder %s29_s22, 8  }
 0x82d   :  { %28 = sbr.rel (!%p26_p6) target bundleno = 16 (0x10), region = 267 }
 0x832   :  { %2922 = vsyncpa [#allocation14], 1 }
 0x833   :  { %2924 = vsyncpa [#allocation14 + $0x1], 1 }
 0x834   :  { %2925 = vsyncmov [#allocation6] }
 0x837   :  { %s2926_s17 = vpop.sfrf %2925 }
 0x838   :  { %p3111_p7 = scmp.ne.s32.totalorder %s2926_s17, 0 }
 0x83a   :  { %2930 = shalt.err (%p3111_p7)  }
 0x83b   :  { %2932 = vsyncmov [#allocation6 + $0x1] }
 0x83e   :  { %s2933_s18 = vpop.sfrf %2932 }
 0x83f   :  { %p3112_p8 = scmp.ne.s32.totalorder %s2933_s18, 0 }
 0x841   :  { %2937 = shalt.err (%p3112_p8)  }
 0x842   :  { %2939 = vsyncmov [#allocation6 + $0x2] }
 0x845   :  { %s2940_s0 = vpop.sfrf %2939 }
 0x846   :  { %p3113_p9 = scmp.ne.s32.totalorder %s2940_s0, 0 }
 0x848   :  { %2944 = shalt.err (%p3113_p9)  }
 0x849   :  { %2946 = vsyncmov [#allocation6 + $0x3] }
 0x84c   :  { %s2947_s19 = vpop.sfrf %2946 }
 0x84d   :  { %p3114_p10 = scmp.ne.s32.totalorder %s2947_s19, 0 }
 0x84f   :  { %2951 = shalt.err (%p3114_p10)  }

</bundles_post_ra>
